<compile_context>
chip_gen: v7x
topology: tpu7x:2x2x1
jax: 0.10.0
libtpu: 0.0.40
codegen_flags: <defaults>
</compile_context>

<pallas_src>
import functools

import jax
import jax.numpy as jnp
from jax import lax
from jax.experimental import pallas as pl
from jax.experimental.pallas import tpu as pltpu


def _round_up(x, m):
    return (x + m - 1) // m * m


def _conv_bn_relu_kernel(x_ref, w_ref, s_ref, b_ref, o_ref, *,
                         th, wo, k, cin_p, cout_p):
    """One (image, H-tile) per grid step.

    x_ref : (1, H+2p, W+2p, cin_p)  bf16  (spatially pre-padded, channel padded)
    w_ref : (k*k*cin_p, cout_p)     bf16  (taps flattened into the K axis)
    s_ref, b_ref : (1, cout_p)      f32   (folded BN scale / bias)
    o_ref : (1, th, wo, cout_p)     f32
    """
    h = pl.program_id(1)
    row0 = pl.multiple_of(h * th, th)
    # rows [row0, row0 + th + k - 1) of the padded image cover this output tile
    xp = x_ref[0, pl.ds(row0, th + k - 1), :, :]          # (th+k-1, W+2p, cin_p)

    # Hoist the dx column shifts once; reuse them across the k dy rows.
    col = [xp[:, dx:dx + wo, :] for dx in range(k)]
    pieces = [col[dx][dy:dy + th].reshape(th * wo, cin_p)
              for dy in range(k) for dx in range(k)]
    patches = pieces[0] if len(pieces) == 1 else jnp.concatenate(pieces, axis=-1)

    # Single lane-dense matmul: (th*wo, k*k*cin_p) @ (k*k*cin_p, cout_p), f32 acc.
    acc = jnp.dot(patches, w_ref[...], preferred_element_type=jnp.float32)

    # Folded BN + ReLU on the f32 accumulator, lane-dense store.
    y = jnp.maximum(acc * s_ref[...] + b_ref[...], 0.0)
    o_ref[0] = y.reshape(th, wo, cout_p).astype(o_ref.dtype)


def convolution_forward(x_nchw, weight_oihw, *, stride=1, with_bn=True,
                        bn_gamma=None, bn_beta=None, bn_mean=None, bn_var=None,
                        conv_bias=None, eps=1e-5):
    """PyTorch-facing forward: x (N, Cin, H, W) f32 -> (N, Cout, Hout, Wout) f32."""
    N, Cin, H, W = x_nchw.shape
    Cout, Cin_w, k, k2 = weight_oihw.shape
    assert Cin_w == Cin and k == k2

    pad = (k - 1) // 2
    Hp, Wp = H + 2 * pad, W + 2 * pad
    Ho, Wo = Hp - k + 1, Wp - k + 1            # stride-1 output size

    cin_p = _round_up(Cin, 128)
    cout_p = _round_up(Cout, 128)

    # Fold BN (inference running stats) or conv bias into per-channel scale/bias.
    if with_bn:
        scale = bn_gamma / jnp.sqrt(bn_var + eps)
        bias = bn_beta - bn_mean * scale
    else:
        scale = jnp.ones((Cout,), jnp.float32)
        bias = (conv_bias if conv_bias is not None
                else jnp.zeros((Cout,), jnp.float32))
    scale_p = jnp.zeros((1, cout_p), jnp.float32).at[0, :Cout].set(
        scale.astype(jnp.float32))
    bias_p = jnp.zeros((1, cout_p), jnp.float32).at[0, :Cout].set(
        bias.astype(jnp.float32))

    # NCHW -> NHWC; spatial halo + channel pad fused in a single pad; bf16 ingest.
    x = jnp.transpose(x_nchw, (0, 2, 3, 1))
    x = jnp.pad(x, ((0, 0), (pad, pad), (pad, pad), (0, cin_p - Cin)))
    x = x.astype(jnp.bfloat16)

    # OIHW -> HWIO -> zero-pad channels -> flatten the taps into the K axis.
    w = jnp.transpose(weight_oihw, (2, 3, 1, 0))
    w = jnp.pad(w, ((0, 0), (0, 0), (0, cin_p - Cin), (0, cout_p - Cout)))
    w = w.reshape(k * k * cin_p, cout_p).astype(jnp.bfloat16)

    # H tiling (gives the pipeline / megacore several steps per image).
    th = 8 if (Ho % 8 == 0 and Ho > 8) else Ho
    n_h = Ho // th

    kernel = functools.partial(_conv_bn_relu_kernel, th=th, wo=Wo, k=k,
                               cin_p=cin_p, cout_p=cout_p)

    out = pl.pallas_call(
        kernel,
        out_shape=jax.ShapeDtypeStruct((N, Ho, Wo, cout_p), jnp.float32),
        grid_spec=pltpu.PrefetchScalarGridSpec(
            num_scalar_prefetch=0,
            grid=(N, n_h),
            in_specs=[
                # Whole padded image; block index constant across h -> fetched once.
                pl.BlockSpec((1, Hp, Wp, cin_p), lambda n, h: (n, 0, 0, 0)),
                pl.BlockSpec((k * k * cin_p, cout_p), lambda n, h: (0, 0)),
                pl.BlockSpec((1, cout_p), lambda n, h: (0, 0)),
                pl.BlockSpec((1, cout_p), lambda n, h: (0, 0)),
            ],
            out_specs=pl.BlockSpec((1, th, Wo, cout_p),
                                   lambda n, h: (n, h, 0, 0)),
        ),
        compiler_params=pltpu.CompilerParams(
            dimension_semantics=("parallel", "parallel"),
            vmem_limit_bytes=32 * 1024 * 1024,
        ),
    )(x, w, scale_p, bias_p)

    # TODO(synk): stride > 1 computes the full stride-1 conv then subsamples
    # (correct but not compute-optimal; CenterNet's `convolution` default is stride=1).
    out = out[:, ::stride, ::stride, :Cout]
    return jnp.transpose(out, (0, 3, 1, 2))


def reference_forward(x_nchw, weight_oihw, *, stride=1, with_bn=True,
                      bn_gamma=None, bn_beta=None, bn_mean=None, bn_var=None,
                      conv_bias=None, eps=1e-5):
    """Pure-JAX reference (lax conv, same bf16 ingest / f32 accumulation)."""
    Cout, Cin, k, _ = weight_oihw.shape
    pad = (k - 1) // 2
    if with_bn:
        scale = bn_gamma / jnp.sqrt(bn_var + eps)
        bias = bn_beta - bn_mean * scale
    else:
        scale = jnp.ones((Cout,), jnp.float32)
        bias = (conv_bias if conv_bias is not None
                else jnp.zeros((Cout,), jnp.float32))
    x = jnp.transpose(x_nchw, (0, 2, 3, 1)).astype(jnp.bfloat16)
    w = jnp.transpose(weight_oihw, (2, 3, 1, 0)).astype(jnp.bfloat16)
    y = lax.conv_general_dilated(
        x, w, window_strides=(stride, stride),
        padding=[(pad, pad), (pad, pad)],
        dimension_numbers=("NHWC", "HWIO", "NHWC"),
        preferred_element_type=jnp.float32)
    y = jnp.maximum(y * scale + bias, 0.0)
    return jnp.transpose(y, (0, 3, 1, 2))


if __name__ == "__main__":
    key = jax.random.PRNGKey(0)
    kx, kw, kg, kb, km, kv = jax.random.split(key, 6)

    N, Cin, Cout, H, W, K = 2, 4, 8, 16, 16, 3
    x = jax.random.normal(kx, (N, Cin, H, W), jnp.float32)
    w = 0.1 * jax.random.normal(kw, (Cout, Cin, K, K), jnp.float32)   # OIHW (PyTorch)
    gamma = 1.0 + 0.1 * jax.random.normal(kg, (Cout,), jnp.float32)
    beta = 0.1 * jax.random.normal(kb, (Cout,), jnp.float32)
    mean = 0.1 * jax.random.normal(km, (Cout,), jnp.float32)
    var = 0.5 + jnp.abs(jax.random.normal(kv, (Cout,), jnp.float32))

    out = convolution_forward(x, w, stride=1, with_bn=True,
                              bn_gamma=gamma, bn_beta=beta,
                              bn_mean=mean, bn_var=var)
    out = jax.block_until_ready(out)

    ref = jax.block_until_ready(
        reference_forward(x, w, stride=1, with_bn=True,
                          bn_gamma=gamma, bn_beta=beta,
                          bn_mean=mean, bn_var=var))

    assert out.shape == (N, Cout, H, W), out.shape
    max_err = jnp.max(jnp.abs(out - ref))
    assert jnp.allclose(out, ref, atol=1e-2, rtol=1e-2), \
        f"mismatch vs JAX reference (max abs err {max_err})"
    print("KERNEL_OK")
</pallas_src>

<mosaic_0001>
module attributes {stable_mosaic.version = 11 : i64} {
  func.func @_conv_bn_relu_kernel(%arg0: i32, %arg1: i32, %arg2: memref<1x18x18x128xbf16, #tpu.memory_space<vmem>>, %arg3: memref<1152x128xbf16, #tpu.memory_space<vmem>>, %arg4: memref<1x128xf32, #tpu.memory_space<vmem>>, %arg5: memref<1x128xf32, #tpu.memory_space<vmem>>, %arg6: memref<1x8x16x128xf32, #tpu.memory_space<vmem>>) attributes {dimension_semantics = [#tpu.dimension_semantics<parallel>, #tpu.dimension_semantics<parallel>], iteration_bounds = array<i64: 2, 2>, scalar_prefetch = 0 : i64, scratch_operands = 0 : i64, tpu.core_type = #tpu.core_type<tc>, window_params = [{transform_indices = @transform_0, window_bounds = array<i64: 1, 18, 18, 128>}, {pipeline_mode = #tpu.pipeline_mode<synchronous>, transform_indices = @transform_1, window_bounds = array<i64: 1152, 128>}, {pipeline_mode = #tpu.pipeline_mode<synchronous>, transform_indices = @transform_2, window_bounds = array<i64: 1, 128>}, {pipeline_mode = #tpu.pipeline_mode<synchronous>, transform_indices = @transform_3, window_bounds = array<i64: 1, 128>}, {transform_indices = @transform_4, window_bounds = array<i64: 1, 8, 16, 128>}]} {
    %c8_i32 = arith.constant 8 : i32
    %0 = arith.muli %arg1, %c8_i32 : i32
    %1 = tpu.assume_multiple %0, 8 : i32
    %c0 = arith.constant 0 : index
    %2 = arith.index_cast %1 : i32 to index
    %c0_0 = arith.constant 0 : index
    %c0_1 = arith.constant 0 : index
    %3 = vector.load %arg2[%c0, %2, %c0_0, %c0_1] : memref<1x18x18x128xbf16, #tpu.memory_space<vmem>>, vector<1x10x18x128xbf16>
    %4 = vector.shape_cast %3 : vector<1x10x18x128xbf16> to vector<10x18x128xbf16>
    %5 = vector.extract_strided_slice %4 {offsets = [0, 0, 0], sizes = [10, 16, 128], strides = [1, 1, 1]} : vector<10x18x128xbf16> to vector<10x16x128xbf16>
    %6 = vector.extract_strided_slice %4 {offsets = [0, 1, 0], sizes = [10, 16, 128], strides = [1, 1, 1]} : vector<10x18x128xbf16> to vector<10x16x128xbf16>
    %7 = vector.extract_strided_slice %4 {offsets = [0, 2, 0], sizes = [10, 16, 128], strides = [1, 1, 1]} : vector<10x18x128xbf16> to vector<10x16x128xbf16>
    %8 = vector.extract_strided_slice %5 {offsets = [0, 0, 0], sizes = [8, 16, 128], strides = [1, 1, 1]} : vector<10x16x128xbf16> to vector<8x16x128xbf16>
    %9 = vector.shape_cast %8 : vector<8x16x128xbf16> to vector<128x128xbf16>
    %10 = vector.extract_strided_slice %6 {offsets = [0, 0, 0], sizes = [8, 16, 128], strides = [1, 1, 1]} : vector<10x16x128xbf16> to vector<8x16x128xbf16>
    %11 = vector.shape_cast %10 : vector<8x16x128xbf16> to vector<128x128xbf16>
    %12 = vector.extract_strided_slice %7 {offsets = [0, 0, 0], sizes = [8, 16, 128], strides = [1, 1, 1]} : vector<10x16x128xbf16> to vector<8x16x128xbf16>
    %13 = vector.shape_cast %12 : vector<8x16x128xbf16> to vector<128x128xbf16>
    %14 = vector.extract_strided_slice %5 {offsets = [1, 0, 0], sizes = [8, 16, 128], strides = [1, 1, 1]} : vector<10x16x128xbf16> to vector<8x16x128xbf16>
    %15 = vector.shape_cast %14 : vector<8x16x128xbf16> to vector<128x128xbf16>
    %16 = vector.extract_strided_slice %6 {offsets = [1, 0, 0], sizes = [8, 16, 128], strides = [1, 1, 1]} : vector<10x16x128xbf16> to vector<8x16x128xbf16>
    %17 = vector.shape_cast %16 : vector<8x16x128xbf16> to vector<128x128xbf16>
    %18 = vector.extract_strided_slice %7 {offsets = [1, 0, 0], sizes = [8, 16, 128], strides = [1, 1, 1]} : vector<10x16x128xbf16> to vector<8x16x128xbf16>
    %19 = vector.shape_cast %18 : vector<8x16x128xbf16> to vector<128x128xbf16>
    %20 = vector.extract_strided_slice %5 {offsets = [2, 0, 0], sizes = [8, 16, 128], strides = [1, 1, 1]} : vector<10x16x128xbf16> to vector<8x16x128xbf16>
    %21 = vector.shape_cast %20 : vector<8x16x128xbf16> to vector<128x128xbf16>
    %22 = vector.extract_strided_slice %6 {offsets = [2, 0, 0], sizes = [8, 16, 128], strides = [1, 1, 1]} : vector<10x16x128xbf16> to vector<8x16x128xbf16>
    %23 = vector.shape_cast %22 : vector<8x16x128xbf16> to vector<128x128xbf16>
    %24 = vector.extract_strided_slice %7 {offsets = [2, 0, 0], sizes = [8, 16, 128], strides = [1, 1, 1]} : vector<10x16x128xbf16> to vector<8x16x128xbf16>
    %25 = vector.shape_cast %24 : vector<8x16x128xbf16> to vector<128x128xbf16>
    %26 = tpu.concatenate %9, %11, %13, %15, %17, %19, %21, %23, %25 in 1 : vector<128x128xbf16>, vector<128x128xbf16>, vector<128x128xbf16>, vector<128x128xbf16>, vector<128x128xbf16>, vector<128x128xbf16>, vector<128x128xbf16>, vector<128x128xbf16>, vector<128x128xbf16> -> vector<128x1152xbf16>
    %c0_2 = arith.constant 0 : index
    %c0_3 = arith.constant 0 : index
    %27 = vector.load %arg3[%c0_2, %c0_3] : memref<1152x128xbf16, #tpu.memory_space<vmem>>, vector<1152x128xbf16>
    %cst = arith.constant dense<0.000000e+00> : vector<128x128xf32>
    %28 = tpu.matmul %26, %27, %cst {dimension_numbers = #tpu.dot_dimension_numbers<[1], [0], [0], [1], [0, 0, 1, 1], [], []>} : vector<128x1152xbf16>, vector<1152x128xbf16>, vector<128x128xf32> -> vector<128x128xf32>
    %c0_4 = arith.constant 0 : index
    %c0_5 = arith.constant 0 : index
    %29 = vector.load %arg4[%c0_4, %c0_5] : memref<1x128xf32, #tpu.memory_space<vmem>>, vector<1x128xf32>
    %30 = vector.broadcast %29 : vector<1x128xf32> to vector<128x128xf32>
    %31 = arith.mulf %28, %30 : vector<128x128xf32>
    %c0_6 = arith.constant 0 : index
    %c0_7 = arith.constant 0 : index
    %32 = vector.load %arg5[%c0_6, %c0_7] : memref<1x128xf32, #tpu.memory_space<vmem>>, vector<1x128xf32>
    %33 = vector.broadcast %32 : vector<1x128xf32> to vector<128x128xf32>
    %34 = arith.addf %31, %33 : vector<128x128xf32>
    %cst_8 = arith.constant 0.000000e+00 : f32
    %35 = vector.broadcast %cst_8 : f32 to vector<128x128xf32>
    %36 = arith.maximumf %34, %35 : vector<128x128xf32>
    %37 = vector.shape_cast %36 : vector<128x128xf32> to vector<8x16x128xf32>
    %c0_9 = arith.constant 0 : index
    %c0_10 = arith.constant 0 : index
    %c0_11 = arith.constant 0 : index
    %c0_12 = arith.constant 0 : index
    %38 = vector.load %arg6[%c0_9, %c0_10, %c0_11, %c0_12] : memref<1x8x16x128xf32, #tpu.memory_space<vmem>>, vector<1x8x16x128xf32>
    %39 = vector.shape_cast %38 : vector<1x8x16x128xf32> to vector<8x16x128xf32>
    %40 = vector.shape_cast %37 : vector<8x16x128xf32> to vector<1x8x16x128xf32>
    tpu.vector_store %arg6[%c0_9, %c0_10, %c0_11, %c0_12], %40 {strides = array<i32>} : memref<1x8x16x128xf32, #tpu.memory_space<vmem>>, vector<1x8x16x128xf32>,
    return
  }
  func.func @transform_0(%arg0: i32, %arg1: i32) -> (i32, i32, i32, i32) {
    %c0_i32 = arith.constant 0 : i32
    %c0_i32_0 = arith.constant 0 : i32
    %c0_i32_1 = arith.constant 0 : i32
    %c0_i32_2 = arith.constant 0 : i32
    return %arg0, %c0_i32, %c0_i32_0, %c0_i32_1 : i32, i32, i32, i32
  }
  func.func @transform_1(%arg0: i32, %arg1: i32) -> (i32, i32) {
    %c0_i32 = arith.constant 0 : i32
    %c0_i32_0 = arith.constant 0 : i32
    %c0_i32_1 = arith.constant 0 : i32
    return %c0_i32, %c0_i32_0 : i32, i32
  }
  func.func @transform_2(%arg0: i32, %arg1: i32) -> (i32, i32) {
    %c0_i32 = arith.constant 0 : i32
    %c0_i32_0 = arith.constant 0 : i32
    %c0_i32_1 = arith.constant 0 : i32
    return %c0_i32, %c0_i32_0 : i32, i32
  }
  func.func @transform_3(%arg0: i32, %arg1: i32) -> (i32, i32) {
    %c0_i32 = arith.constant 0 : i32
    %c0_i32_0 = arith.constant 0 : i32
    %c0_i32_1 = arith.constant 0 : i32
    return %c0_i32, %c0_i32_0 : i32, i32
  }
  func.func @transform_4(%arg0: i32, %arg1: i32) -> (i32, i32, i32, i32) {
    %c0_i32 = arith.constant 0 : i32
    %c0_i32_0 = arith.constant 0 : i32
    %c0_i32_1 = arith.constant 0 : i32
    return %arg0, %arg1, %c0_i32, %c0_i32_0 : i32, i32, i32, i32
  }
}

</mosaic_0001>

<bundles_post_ra>
// kernel: tpu_custom_call.1
= control target key start
LH: loop header
LB: loop body
LE: loop exit
PB: predicated region body
PF: predicated region fallthrough
CT: control target
= control target key end

     0   :  { %9 = vsyncpa [#allocation3], 0  ;;  %s3543_s0 = inlined_call_operand.vmem [shape: bf16[2,18,18,128], index: 0, kind: input, shape index: {}]   ;;  %s3544_s1 = inlined_call_operand.vmem [shape: bf16[1152,128], index: 1, kind: input, shape index: {}]   ;;  %s3545_s2 = inlined_call_operand.vmem [shape: f32[1,128], index: 2, kind: input, shape index: {}]   ;;  %s3546_s3 = inlined_call_operand.vmem [shape: f32[1,128], index: 3, kind: input, shape index: {}]   ;;  %s3547_s4 = inlined_call_operand.hbm [shape: f32[2,16,16,128], index: 4, kind: output, shape index: {}]  }
   0x1   :  { %11 = vsyncpa [#allocation3 + $0x1], 0  ;;  %s2679_s15 = smov 0   ;;  %s2681_s16 = smov 0  }
   0x2   :  { %s2683_s17 = smov 0   ;;  %s2685_s18 = smov 0  }
   0x3   :  { %s2687_s19 = smov 0   ;;  %s2689_s20 = smov 0  }
   0x4   :  { %s2691_s21 = smov 0   ;;  %s2693_s22 = smov 0  }
   0x5 LB: > { %s1946_s23 = sadd.s32 4294967295, %s2649_s22   ;;  %s1947_s24 = sadd.s32 4294967294, %s2649_s22   ;;  %s2649_s22 = sphi %s2693_s22, %s17_s22   ;;  %s2645_s21 = sphi %s2691_s21, %s3560_s21   ;;  %s2641_s20 = sphi %s2689_s20, %s3559_s20   ;;  %s2637_s19 = sphi %s2687_s19, %s3558_s19   ;;  %s2633_s18 = sphi %s2685_s18, %s3557_s18   ;;  %s2629_s17 = sphi %s2683_s17, %s3556_s17   ;;  %s2625_s16 = sphi %s2681_s16, %s3555_s16   ;;  %s2621_s15 = sphi %s2679_s15, %s3554_s15  }
   0x6   : > { %s26_s25 = sadd.s32 1, %s2641_s20  ;;  %s29_s26 = sadd.s32 1, %s2645_s21 }
   0x7   : > { %p27_p0 = scmp.ge.s32.totalorder %s26_s25, 2  ;;  %p137_p1 = scmp.ne.s32.totalorder %s2629_s17, %s2625_s16 }
   0x8   : > { %p138_p2 = scmp.eq.s32.totalorder %s1946_s23, 3  ;;  %p143_p5 = scmp.ne.s32.totalorder %s2625_s16, %s2621_s15 }
   0x9   : > { %s3562_s25 = smov (%p27_p0, %s26_s25), 0  ;;  %s3564_s26 = smov (!%p27_p0, %s29_s26), %s2645_s21 }
   0xa   : > { %s123_s27 = ssub.s32 %s2641_s20, %s3562_s25  ;;  %p2730_p3 = por %p138_p2, %p137_p1 }
   0xb   : > { %p31_p4 = scmp.ge.s32.totalorder %s3564_s26, 2  ;;  %p144_p6 = scmp.eq.s32.totalorder %s1947_s24, 3 }
   0xc   : > { %p1950_p7 = scmp.ge.s32.totalorder %s2649_s22, 1  ;;  %p179_p9 = scmp.lt.s32.totalorder %s2649_s22, 5 }
   0xd   : > { %s3566_s26 = smov (%p31_p4, %s3564_s26), 0  ;;  %p2739_p8 = por %p144_p6, %p143_p5 }
   0xe   : > { %s122_s30 = ssub.s32 %s2645_s21, %s3566_s26  ;;  %s127_s5 = sadd.s32 1, %s2629_s17 }
   0xf   : > { %s124_s6 = sor.u32 %s123_s27, %s122_s30  ;;  %p180_p10 = pnand %p1950_p7, %p179_p9 }
  0x10   : > { %p125_p11 = scmp.eq.s32.totalorder %s124_s6, 0  ;;  %v2473_v0 = vld [vmem:[%s3544_s1 + $0x40] sm:$0xff] (!%p180_p10)   ;;  %v2477_v4 = vld [vmem:[%s3544_s1 + $0x48] sm:$0xff] (!%p180_p10)   ;;  %v2481_v8 = vld [vmem:[%s3544_s1 + $0x50] sm:$0xff] (!%p180_p10)   ;;  %p205_p12 = scmp.lt.s32.totalorder (!%p180_p10), %s2637_s19, 1  ;;  %vm465_vm0 = vcmask (!%p180_p10), 1042432  }
  0x11   : > { %183 = sbr.rel (%p180_p10) target bundleno = 426 (0x1aa), region = 36  ;;  %v2474_v1 = vld [vmem:[%s3544_s1 + $0xc0] sm:$0xff] (!%p180_p10)   ;;  %2079 = vmatprep.subr.bf16.mxu0 (!%p180_p10), %v2473_v0  ;;  %v2478_v5 = vld [vmem:[%s3544_s1 + $0xc8] sm:$0xff] (!%p180_p10)   ;;  %v2482_v9 = vld [vmem:[%s3544_s1 + $0xd0] sm:$0xff] (!%p180_p10)   ;;  %vm466_vm1 = vcmask (!%p180_p10), 1046532   ;;  %s2073_s27 = sshll.u32 (!%p180_p10), %s2637_s19, 5 }
  0x12   : > { %s2748_s7 = scalar_select %p125_p11, %s2629_s17, %s127_s5  }
  0x13   : > { %v2475_v2 = vld [vmem:[%s3544_s1] sm:$0xff] (!%p180_p10)   ;;  %2143 = vmatprep.subr.bf16.mxu1 (!%p180_p10), %v2474_v1  ;;  %v2479_v6 = vld [vmem:[%s3544_s1 + $0x8] sm:$0xff] (!%p180_p10)   ;;  %v2483_v10 = vld [vmem:[%s3544_s1 + $0x10] sm:$0xff] (!%p180_p10)   ;;  %s2077_s11 = smul.u32 (!%p180_p10), 96, %s2633_s18  ;;  %vm246_vm2 = vsmask.f32 (!%p180_p10), 3328 }
  0x14   : > { %v2476_v3 = vld [vmem:[%s3544_s1 + $0x80] sm:$0xff] (!%p180_p10)   ;;  %2080 = vmatpush3.bf16.msra.mxu0 (!%p180_p10), %v2475_v2  ;;  %v2480_v7 = vld [vmem:[%s3544_s1 + $0x88] sm:$0xff] (!%p180_p10)   ;;  %v2484_v11 = vld [vmem:[%s3544_s1 + $0x90] sm:$0xff] (!%p180_p10)   ;;  %vm247_vm3 = vsmask.f32 (!%p180_p10), 7440 }
  0x15   : > { %2144 = vmatpush3.bf16.msra.mxu1 (!%p180_p10), %v2476_v3  ;;  %2081 = vmatprep.subr.bf16.mxu0 (!%p180_p10), %v2477_v4  ;;  %v2485_v12 = vld [vmem:[%s3544_s1 + $0x58] sm:$0xff] (!%p180_p10)   ;;  %v2489_v16 = vld [vmem:[%s3544_s1 + $0x60] sm:$0xff] (!%p180_p10)   ;;  %v2493_v20 = vld [vmem:[%s3544_s1 + $0x68] sm:$0xff] (!%p180_p10)  }
  0x16   : > { %2145 = vmatprep.subr.bf16.mxu1 (!%p180_p10), %v2478_v5  ;;  %v2486_v13 = vld [vmem:[%s3544_s1 + $0xd8] sm:$0xff] (!%p180_p10)   ;;  %v2490_v17 = vld [vmem:[%s3544_s1 + $0xe0] sm:$0xff] (!%p180_p10)   ;;  %v2494_v21 = vld [vmem:[%s3544_s1 + $0xe8] sm:$0xff] (!%p180_p10)  }
  0x17   : > { %v2487_v14 = vld [vmem:[%s3544_s1 + $0x18] sm:$0xff] (!%p180_p10)   ;;  %v2491_v18 = vld [vmem:[%s3544_s1 + $0x20] sm:$0xff] (!%p180_p10)   ;;  %v2495_v22 = vld [vmem:[%s3544_s1 + $0x28] sm:$0xff] (!%p180_p10)  }
  0x18   : > { %2082 = vmatpush3.bf16.msra.mxu0 %v2479_v6  ;;  %v2488_v15 = vld [vmem:[%s3544_s1 + $0x98] sm:$0xff]   ;;  %s206_s6 = scalar_select %p205_p12, %s2637_s19, 1  ;;  %v2492_v19 = vld [vmem:[%s3544_s1 + $0xa0] sm:$0xff]   ;;  %v2496_v23 = vld [vmem:[%s3544_s1 + $0xa8] sm:$0xff]  }
  0x19   : > { %2146 = vmatpush3.bf16.msra.mxu1 %v2480_v7  ;;  %2083 = vmatprep.subr.bf16.mxu0 %v2481_v8  ;;  %v2497_v24 = vld [vmem:[%s3544_s1 + $0x70] sm:$0xff]   ;;  %v2501_v28 = vld [vmem:[%s3544_s1 + $0x78] sm:$0xff]   ;;  %vm2876_vm4 = vmor %vm465_vm0, %vm466_vm1 }
  0x1a   : > { %2147 = vmatprep.subr.bf16.mxu1 %v2482_v9  ;;  %s2399_s24 = smul.u32 216, %s206_s6  ;;  %v2498_v25 = vld [vmem:[%s3544_s1 + $0xf0] sm:$0xff]   ;;  %v2502_v29 = vld [vmem:[%s3544_s1 + $0xf8] sm:$0xff]   ;;  %vm2882_vm5 = vmor %vm246_vm2, %vm247_vm3  ;;  %s2651_s6 = smov [#allocation2]  }
  0x1b   : > { %v2499_v26 = vld [vmem:[%s3544_s1 + $0x30] sm:$0xff]   ;;  %v2503_v30 = vld [vmem:[%s3544_s1 + $0x38] sm:$0xff]   ;;  %v2507_v56 = vld [vmem:[%s3544_s1 + $0x140] sm:$0xff]   ;;  %s2559_s14 = sshll.u32 %s2651_s6, 4  ;;  %s2560_s14 = int_to_ptr.vmem [resolvable:$false] %s2559_s14 }
  0x1c   : > { %2084 = vmatpush3.bf16.msra.mxu0 %v2483_v10  ;;  %s209_s23 = scalar_lea.vmem %s3543_s0, %s2399_s24  ;;  %v2500_v27 = vld [vmem:[%s3544_s1 + $0xb0] sm:$0xff]   ;;  %v2504_v31 = vld [vmem:[%s3544_s1 + $0xb8] sm:$0xff]   ;;  %v2508_v60 = vld [vmem:[%s3544_s1 + $0x1c0] sm:$0xff]  }
  0x1d   : > { %2148 = vmatpush3.bf16.msra.mxu1 %v2484_v11  ;;  %2085 = vmatprep.subr.bf16.mxu0 %v2485_v12  ;;  %s2846_s12 = scalar_lea.vmem %s209_s23, %s2077_s11  ;;  %v2509_v6 = vld [vmem:[%s3544_s1 + $0x100] sm:$0xff]   ;;  %s2078_s23 = sshll.u32 %s2633_s18, 4 }
  0x1e   : > { %2149 = vmatprep.subr.bf16.mxu1 %v2486_v13  ;;  %v2855_v32 = vld [vmem:[%s2846_s12] sm:$0xf]  ;;  %v2858_v33 = vld [vmem:[%s2846_s12 + $0x4] sm:$0xf]  ;;  %v218_v34 = vld [vmem:[%s2846_s12 + $0x8] sm:$0x1]  ;;  %s3452_s18 = sadd.s32 %s2078_s23, %s2073_s27 }
  0x1f   : > { %v250_v35 = vshrl.u32 %v2855_v32, 16  ;;  %v253_v36 = vshll.u32 %v2855_v32, 16  ;;  %v259_v37 = vshll.u32 %v2858_v33, 16  ;;  %v263_v38 = vshrl.u32 %v2858_v33, 16  ;;  %v2866_v40 = vld [vmem:[%s2846_s12 + $0xc] sm:$0xf] }
  0x20   : > { %2086 = vmatpush3.bf16.msra.mxu0 %v2487_v14  ;;  %v269_v39 = vshll.u32 %v218_v34, 16  ;;  %v2869_v43 = vld [vmem:[%s2846_s12 + $0x10] sm:$0xf]  ;;  %v274_v44 = vshrl.u32 %v2866_v40, 16  ;;  %v277_v45 = vshll.u32 %v2866_v40, 16  ;;  %v1956_v59 = vrot.slane %v2855_v32, 9 }
  0x21   : > { %2150 = vmatpush3.bf16.msra.mxu1 %v2488_v15  ;;  %2087 = vmatprep.subr.bf16.mxu0 %v2489_v16  ;;  %v252_v41 = vrot.slane %v250_v35, 4  ;;  %v255_v42 = vrot.slane %v253_v36, 5  ;;  %v261_v46 = vrot.slane %v259_v37, 5  ;;  %v265_v47 = vrot.slane %v263_v38, 4  ;;  %v2510_v7 = vld [vmem:[%s3544_s1 + $0x180] sm:$0xff]   ;;  %s2074_s19 = sshll.u32 %s3452_s18, 7 }
  0x22   : > { %2151 = vmatprep.subr.bf16.mxu1 %v2490_v17  ;;  %v271_v48 = vrot.slane %v269_v39, 5  ;;  %v283_v49 = vshll.u32 %v2869_v43, 16  ;;  %v276_v53 = vrot.slane %v274_v44, 4  ;;  %v279_v54 = vrot.slane %v277_v45, 5  ;;  %v221_v8 = vld [vmem:[%s2846_s12 + $0x14] sm:$0x1]  ;;  %s3479_s10 = scalar_lea.hbm %s3547_s4, %s2074_s19 }
  0x23   : > { %v256_v52 = vor.u32 %v255_v42, %v252_v41  ;;  %v287_v55 = vshrl.u32 %v2869_v43, 16  ;;  %v266_v57 = vor.u32 %v265_v47, %v261_v46  ;;  %v2892_v58 = vcombine.low %v2866_v40, %v2869_v43  ;;  %v2916_v14 = vld [vmem:[%s2846_s12 + $0x18] sm:$0xf]  ;;  %v2919_v15 = vld [vmem:[%s2846_s12 + $0x1c] sm:$0xf]  ;;  %v2517_v42 = vld [vmem:[%s3544_s1 + $0x150] sm:$0xff]  }
  0x24   : > { %2088 = vmatpush3.bf16.msra.mxu0 %v2491_v18  ;;  %v473_v62 = vrot.slane %v218_v34, 5  ;;  %v470_v63 = vrot.slane %v2858_v33, 5  ;;  %v280_v0 = vor.u32 %v279_v54, %v276_v53  ;;  %v1966_v11 = vcombine.low %v2855_v32, %v2858_v33  ;;  %v2514_v32 = vld [vmem:[%s3544_s1 + $0x108] sm:$0xff]   ;;  %v224_v38 = vld [vmem:[%s2846_s12 + $0x20] sm:$0x1] }
  0x25   : > { %2152 = vmatpush3.bf16.msra.mxu1 %v2492_v19  ;;  %2089 = vmatprep.subr.bf16.mxu0 %v2493_v20  ;;  %v257_v61 = vrot.slane %v256_v52, 4  ;;  %v267_v1 = vrot.slane %v266_v57, 4  ;;  %v289_v2 = vrot.slane %v287_v55, 4  ;;  %v285_v12 = vrot.slane %v283_v49, 5  ;;  %v2515_v33 = vld [vmem:[%s3544_s1 + $0x188] sm:$0xff]  }
  0x26   : > { %2153 = vmatprep.subr.bf16.mxu1 %v2494_v21  ;;  %1417 = vmatprep.mubr.bf16.mxu1 %v2892_v58  ;;  %v471_v4 = vsel %vm2876_vm4, %v1956_v59, %v470_v63  ;;  %v472_v5 = vrot.slane %v470_v63, 4  ;;  %v281_v9 = vrot.slane %v280_v0, 4  ;;  %v293_v13 = vshll.u32 %v221_v8, 16  ;;  %v2964_v47 = vld [vmem:[%s2846_s12 + $0x28] sm:$0xf] }
  0x27   : > { %v262_v3 = vsel %vm2882_vm5, %v257_v61, %v261_v46  ;;  %v272_v10 = vsel %vm2882_vm5, %v267_v1, %v271_v48  ;;  %v298_v18 = vshrl.u32 %v2916_v14, 16  ;;  %v301_v19 = vshll.u32 %v2916_v14, 16  ;;  %v2961_v46 = vld [vmem:[%s2846_s12 + $0x24] sm:$0xf]  ;;  %v2519_v1 = vld [vmem:[%s3544_s1 + $0x110] sm:$0xff]  }
  0x28   : > { %2090 = vmatpush3.bf16.msra.mxu0 %v2495_v22  ;;  %v1974_v16 = vcombine.low %v262_v3, %v272_v10  ;;  %v474_v17 = vsel %vm2876_vm4, %v472_v5, %v473_v62  ;;  %v290_v21 = vor.u32 %v289_v2, %v285_v12  ;;  %v295_v22 = vrot.slane %v293_v13, 5 }
  0x29   : > { %2154 = vmatpush3.bf16.msra.mxu1 %v2496_v23  ;;  %2091 = vmatprep.subr.bf16.mxu0 %v2497_v24  ;;  %v1982_v20 = vcombine.low %v471_v4, %v474_v17  ;;  %v2512_v23 = vld [vmem:[%s3544_s1 + $0x148] sm:$0xff]   ;;  %v311_v24 = vshrl.u32 %v2919_v15, 16  ;;  %v300_v36 = vrot.slane %v298_v18, 4  ;;  %v303_v39 = vrot.slane %v301_v19, 5 }
  0x2a   : > { %2155 = vmatprep.subr.bf16.mxu1 %v2498_v25  ;;  %1320 = vmatprep.mubr.bf16.mxu0 %v1974_v16  ;;  %v2931_v25 = vcombine.low %v2916_v14, %v2919_v15  ;;  %v317_v45 = vshll.u32 %v224_v38, 16  ;;  %v1958_v48 = vrot.slane %v2916_v14, 9  ;;  %v322_v54 = vshrl.u32 %v2961_v46, 16  ;;  %v3007_v16 = vld [vmem:[%s2846_s12 + $0x34] sm:$0xf] }
  0x2b   : > { %v313_v41 = vrot.slane %v311_v24, 4  ;;  %v304_v52 = vor.u32 %v303_v39, %v300_v36  ;;  %v335_v57 = vshrl.u32 %v2964_v47, 16  ;;  %v2975_v59 = vcombine.low %v2961_v46, %v2964_v47  ;;  %v2527_v39 = vld [vmem:[%s3544_s1 + $0x160] sm:$0xff]  }
  0x2c   : > { %2092 = vmatpush3.bf16.msra.mxu0 %v2499_v26  ;;  %v1957_v26 = vrot.slane %v2866_v40, 9  ;;  %v307_v40 = vshll.u32 %v2919_v15, 16  ;;  %v319_v55 = vrot.slane %v317_v45, 5  ;;  %v484_v63 = vrot.slane %v2919_v15, 5  ;;  %v3004_v15 = vld [vmem:[%s2846_s12 + $0x30] sm:$0xf] }
  0x2d   : > { %2156 = vmatpush3.bf16.msra.mxu1 %v2500_v27  ;;  %2093 = vmatprep.subr.bf16.mxu0 %v2501_v28  ;;  %v477_v27 = vrot.slane %v2869_v43, 5  ;;  %v2513_v28 = vld [vmem:[%s3544_s1 + $0x1c8] sm:$0xff]   ;;  %v305_v61 = vrot.slane %v304_v52, 4  ;;  %v487_v0 = vrot.slane %v224_v38, 5  ;;  %v331_v10 = vshll.u32 %v2964_v47, 16  ;;  %v2525_v38 = vld [vmem:[%s3544_s1 + $0x198] sm:$0xff]  }
  0x2e   : > { %2157 = vmatprep.subr.bf16.mxu1 %v2502_v29  ;;  %v286_v29 = vsel %vm2882_vm5, %v281_v9, %v285_v12  ;;  %v309_v53 = vrot.slane %v307_v40, 5  ;;  %v485_v4 = vsel %vm2876_vm4, %v1958_v48, %v484_v63  ;;  %v486_v5 = vrot.slane %v484_v63, 4  ;;  %v230_v40 = vld [vmem:[%s2846_s12 + $0x38] sm:$0x1]  ;;  %v3049_v52 = vld [vmem:[%s2846_s12 + $0x3c] sm:$0xf] }
  0x2f   : > { %v478_v34 = vsel %vm2876_vm4, %v1957_v26, %v477_v27  ;;  %v479_v35 = vrot.slane %v477_v27, 4  ;;  %v1959_v17 = vrot.slane %v2961_v46, 9  ;;  %v346_v24 = vshrl.u32 %v3004_v15, 16 }
  0x30   : > { %2094 = vmatpush3.bf16.msra.mxu0 %v2503_v30  ;;  %v291_v30 = vrot.slane %v290_v21, 4  ;;  %v314_v62 = vor.u32 %v313_v41, %v309_v53  ;;  %v310_v2 = vsel %vm2882_vm5, %v305_v61, %v309_v53  ;;  %v488_v13 = vsel %vm2876_vm4, %v486_v5, %v487_v0  ;;  %v3052_v53 = vld [vmem:[%s2846_s12 + $0x40] sm:$0xf] }
  0x31   : > { %2158 = vmatpush3.bf16.msra.mxu1 %v2504_v31  ;;  %2207 = vmatprep.subr.bf16.mxu0 %v2507_v56  ;;  %v480_v31 = vrot.slane %v221_v8, 5  ;;  %v325_v56 = vshll.u32 %v2961_v46, 16  ;;  %v324_v8 = vrot.slane %v322_v54, 4  ;;  %v3012_v19 = vcombine.low %v485_v4, %v488_v13 }
  0x32   : > { %2271 = vmatprep.subr.bf16.mxu1 %v2508_v60  ;;  %v296_v37 = vsel %vm2882_vm5, %v291_v30, %v295_v22  ;;  %v2518_v60 = vld [vmem:[%s3544_s1 + $0x1d0] sm:$0xff]   ;;  %v315_v3 = vrot.slane %v314_v62, 4  ;;  %v333_v21 = vrot.slane %v331_v10, 5  ;;  %v2523_v22 = vld [vmem:[%s3544_s1 + $0x1d8] sm:$0xff]   ;;  %v349_v26 = vshll.u32 %v3004_v15, 16  ;;  %v2530_v10 = vld [vmem:[%s3544_s1 + $0x1a0] sm:$0xff]  }
  0x33   : > { %1321 = vmatmul.mubr.bf16.vlgmr.msra.gmra.mrb[0].mxu0 %v1966_v11  ;;  %v2956_v43 = vcombine.low %v286_v29, %v296_v37  ;;  %v481_v44 = vsel %vm2876_vm4, %v479_v35, %v480_v31  ;;  %v327_v9 = vrot.slane %v325_v56, 5  ;;  %v337_v11 = vrot.slane %v335_v57, 4 }
  0x34   : > { %1418 = vmatmul.mubr.bf16.vlgmr.msra.gmra.mrb[0].mxu1 %v1982_v20  ;;  %2208 = vmatpush3.bf16.msra.mxu0 %v2509_v6  ;;  %v2967_v49 = vcombine.low %v478_v34, %v481_v44  ;;  %v2520_v6 = vld [vmem:[%s3544_s1 + $0x190] sm:$0xff]   ;;  %v320_v12 = vsel %vm2882_vm5, %v315_v3, %v319_v55  ;;  %v359_v27 = vshrl.u32 %v3007_v16, 16  ;;  %v3023_v30 = vcombine.low %v3004_v15, %v3007_v16 }
  0x35   : > { %2272 = vmatpush3.bf16.msra.mxu1 %v2510_v7  ;;  %1425 = vmatprep.mubr.bf16.mxu1 %v2931_v25  ;;  %v227_v7 = vld [vmem:[%s2846_s12 + $0x2c] sm:$0x1]  ;;  %v3010_v18 = vcombine.low %v310_v2, %v320_v12  ;;  %v328_v20 = vor.u32 %v327_v9, %v324_v8  ;;  %v338_v29 = vor.u32 %v337_v11, %v333_v21  ;;  %v491_v31 = vrot.slane %v2964_v47, 5  ;;  %v233_v12 = vld [vmem:[%s2846_s12 + $0x44] sm:$0x1] }
  0x36   : > { %2209 = vmatprep.subr.bf16.mxu0 %v2512_v23  ;;  %2273 = vmatprep.subr.bf16.mxu1 %v2513_v28  ;;  %v341_v14 = vshll.u32 %v227_v7, 16  ;;  %v348_v41 = vrot.slane %v346_v24, 4  ;;  %v355_v44 = vshll.u32 %v3007_v16, 16  ;;  %v361_v45 = vrot.slane %v359_v27, 4  ;;  %v2532_v11 = vld [vmem:[%s3544_s1 + $0x168] sm:$0xff]  }
  0x37   : > { %1328 = vmatprep.mubr.bf16.mxu0 %v2956_v43  ;;  %v329_v28 = vrot.slane %v328_v20, 4  ;;  %v339_v35 = vrot.slane %v338_v29, 4  ;;  %v492_v36 = vsel %vm2876_vm4, %v1959_v17, %v491_v31  ;;  %v493_v37 = vrot.slane %v491_v31, 4  ;;  %v2533_v31 = vld [vmem:[%s3544_s1 + $0x1e8] sm:$0xff]  }
  0x38   : > { %2210 = vmatpush3.bf16.msra.mxu0 %v2514_v32  ;;  %v343_v23 = vrot.slane %v341_v14, 5  ;;  %v494_v32 = vrot.slane %v227_v7, 5  ;;  %v365_v48 = vshll.u32 %v230_v40, 16  ;;  %v1960_v54 = vrot.slane %v3004_v15, 9 }
  0x39   : > { %2274 = vmatpush3.bf16.msra.mxu1 %v2515_v33  ;;  %2211 = vmatprep.subr.bf16.mxu0 %v2517_v42  ;;  %v2524_v33 = vld [vmem:[%s3544_s1 + $0x118] sm:$0xff]   ;;  %v334_v34 = vsel %vm2882_vm5, %v329_v28, %v333_v21  ;;  %v351_v42 = vrot.slane %v349_v26, 5  ;;  %v357_v57 = vrot.slane %v355_v44, 5  ;;  %v370_v62 = vshrl.u32 %v3049_v52, 16 }
  0x3a   : > { %2275 = vmatprep.subr.bf16.mxu1 %v2518_v60  ;;  %v344_v46 = vsel %vm2882_vm5, %v339_v35, %v343_v23  ;;  %v495_v47 = vsel %vm2876_vm4, %v493_v37, %v494_v32  ;;  %v2528_v60 = vld [vmem:[%s3544_s1 + $0x1e0] sm:$0xff]   ;;  %v367_v61 = vrot.slane %v365_v48, 5  ;;  %v373_v63 = vshll.u32 %v3049_v52, 16  ;;  %v3094_v23 = vld [vmem:[%s2846_s12 + $0x4c] sm:$0xf]  ;;  %v2537_v48 = vld [vmem:[%s3544_s1 + $0x170] sm:$0xff]  }
  0x3b   : > { %1329 = vmatmul.mubr.bf16.gmra.mrb[4].mxu0 %v2892_v58  ;;  %v2522_v58 = vld [vmem:[%s3544_s1 + $0x158] sm:$0xff]   ;;  %v3055_v55 = vcombine.low %v334_v34, %v344_v46  ;;  %v352_v56 = vor.u32 %v351_v42, %v348_v41  ;;  %v383_v0 = vshrl.u32 %v3052_v53, 16  ;;  %v362_v3 = vor.u32 %v361_v45, %v357_v57  ;;  %v2534_v41 = vld [vmem:[%s3544_s1 + $0x128] sm:$0xff]  }
  0x3c   : > { %1426 = vmatmul.mubr.bf16.gmra.mrb[4].mxu1 %v2967_v49  ;;  %2212 = vmatpush3.bf16.msra.mxu0 %v2519_v1  ;;  %v3064_v1 = vcombine.low %v492_v36, %v495_v47  ;;  %v498_v4 = vrot.slane %v3007_v16, 5  ;;  %v3069_v5 = vcombine.low %v3049_v52, %v3052_v53  ;;  %v372_v13 = vrot.slane %v370_v62, 4  ;;  %v2535_v47 = vld [vmem:[%s3544_s1 + $0x1a8] sm:$0xff]  }
  0x3d   : > { %1433 = vmatprep.mubr.bf16.mxu1 %v2975_v59  ;;  %2276 = vmatpush3.bf16.msra.mxu1 %v2520_v6  ;;  %v353_v2 = vrot.slane %v352_v56, 4  ;;  %v501_v6 = vrot.slane %v230_v40, 5  ;;  %v363_v8 = vrot.slane %v362_v3, 4  ;;  %v375_v14 = vrot.slane %v373_v63, 5  ;;  %v3137_v63 = vld [vmem:[%s2846_s12 + $0x54] sm:$0xf] }
  0x3e   : > { %2213 = vmatprep.subr.bf16.mxu0 %v2522_v58  ;;  %1336 = vmatprep.mubr.bf16.mxu0 %v3010_v18  ;;  %v2529_v58 = vld [vmem:[%s3544_s1 + $0x120] sm:$0xff]   ;;  %v500_v9 = vrot.slane %v498_v4, 4  ;;  %v379_v15 = vshll.u32 %v3052_v53, 16  ;;  %v385_v16 = vrot.slane %v383_v0, 4  ;;  %v499_v20 = vsel %vm2876_vm4, %v1960_v54, %v498_v4  ;;  %v3140_v0 = vld [vmem:[%s2846_s12 + $0x58] sm:$0xf] }
  0x3f   : > { %2277 = vmatprep.subr.bf16.mxu1 %v2523_v22  ;;  %v358_v7 = vsel %vm2882_vm5, %v353_v2, %v357_v57  ;;  %v368_v17 = vsel %vm2882_vm5, %v363_v8, %v367_v61  ;;  %v389_v21 = vshll.u32 %v233_v12, 16  ;;  %v3091_v22 = vld [vmem:[%s2846_s12 + $0x48] sm:$0xf]  ;;  %v1961_v24 = vrot.slane %v3049_v52, 9  ;;  %v3128_v52 = vld [vmem:[%s2846_s12 + $0x50] sm:$0x1] }
  0x40   : > { %2214 = vmatpush3.bf16.msra.mxu0 %v2524_v33  ;;  %v3097_v26 = vcombine.low %v358_v7, %v368_v17  ;;  %v502_v27 = vsel %vm2876_vm4, %v500_v9, %v501_v6  ;;  %v376_v28 = vor.u32 %v375_v14, %v372_v13  ;;  %v381_v29 = vrot.slane %v379_v15, 5  ;;  %v2538_v7 = vld [vmem:[%s3544_s1 + $0x1f0] sm:$0xff]  }
  0x41   : > { %2278 = vmatpush3.bf16.msra.mxu1 %v2525_v38  ;;  %2215 = vmatprep.subr.bf16.mxu0 %v2527_v39  ;;  %v391_v32 = vrot.slane %v389_v21, 5  ;;  %v394_v33 = vshrl.u32 %v3091_v22, 16  ;;  %v397_v34 = vshll.u32 %v3091_v22, 16  ;;  %v407_v35 = vshrl.u32 %v3094_v23, 16  ;;  %v2539_v17 = vld [vmem:[%s3544_s1 + $0x130] sm:$0xff]  }
  0x42   : > { %2279 = vmatprep.subr.bf16.mxu1 %v2528_v60  ;;  %v377_v36 = vrot.slane %v376_v28, 4  ;;  %v386_v37 = vor.u32 %v385_v16, %v381_v29  ;;  %v505_v38 = vrot.slane %v3052_v53, 5  ;;  %v3110_v39 = vcombine.low %v499_v20, %v502_v27  ;;  %v2542_v27 = vld [vmem:[%s3544_s1 + $0x178] sm:$0xff]  }
  0x43   : > { %1337 = vmatmul.mubr.bf16.gmra.mrb[8].mxu0 %v2931_v25  ;;  %v508_v40 = vrot.slane %v233_v12, 5  ;;  %v3119_v45 = vcombine.low %v3091_v22, %v3094_v23  ;;  %v396_v53 = vrot.slane %v394_v33, 4  ;;  %v399_v54 = vrot.slane %v397_v34, 5  ;;  %v239_v28 = vld [vmem:[%s2846_s12 + $0x5c] sm:$0x1] }
  0x44   : > { %1434 = vmatmul.mubr.bf16.gmra.mrb[8].mxu1 %v3012_v19  ;;  %1344 = vmatprep.mubr.bf16.mxu0 %v3055_v55  ;;  %v382_v42 = vsel %vm2882_vm5, %v377_v36, %v381_v29  ;;  %v387_v44 = vrot.slane %v386_v37, 4  ;;  %v507_v46 = vrot.slane %v505_v38, 4  ;;  %v403_v56 = vshll.u32 %v3094_v23, 16 }
  0x45   : > { %1441 = vmatprep.mubr.bf16.mxu1 %v3023_v30  ;;  %2216 = vmatpush3.bf16.msra.mxu0 %v2529_v58  ;;  %v409_v57 = vrot.slane %v407_v35, 4  ;;  %v506_v61 = vsel %vm2876_vm4, %v1961_v24, %v505_v38  ;;  %v413_v62 = vshll.u32 %v3128_v52, 16  ;;  %v1962_v2 = vrot.slane %v3091_v22, 9 }
  0x46   : > { %2280 = vmatpush3.bf16.msra.mxu1 %v2530_v10  ;;  %2217 = vmatprep.subr.bf16.mxu0 %v2532_v11  ;;  %v392_v60 = vsel %vm2882_vm5, %v387_v44, %v391_v32  ;;  %v509_v4 = vsel %vm2876_vm4, %v507_v46, %v508_v40  ;;  %v400_v6 = vor.u32 %v399_v54, %v396_v53  ;;  %v405_v58 = vrot.slane %v403_v56, 5  ;;  %v2543_v40 = vld [vmem:[%s3544_s1 + $0x1f8] sm:$0xff]   ;;  %v3190_v44 = vld [vmem:[%s2846_s12 + $0x60] sm:$0xf]  ;;  %v3193_v46 = vld [vmem:[%s2846_s12 + $0x64] sm:$0xf] }
  0x47   : > { %2281 = vmatprep.subr.bf16.mxu1 %v2533_v31  ;;  %v3145_v3 = vcombine.low %v382_v42, %v392_v60  ;;  %v415_v8 = vrot.slane %v413_v62, 5  ;;  %v418_v9 = vshrl.u32 %v3137_v63, 16  ;;  %v421_v10 = vshll.u32 %v3137_v63, 16  ;;  %v2544_v54 = vld [vmem:[%s3544_s1 + $0x138] sm:$0xff]   ;;  %v2546_v62 = vld [vmem:[%s3544_s1 + $0x200] sm:$0xff]  }
  0x48   : > { %v431_v11 = vshrl.u32 %v3140_v0, 16  ;;  %v401_v12 = vrot.slane %v400_v6, 4  ;;  %v410_v13 = vor.u32 %v409_v57, %v405_v58  ;;  %v512_v14 = vrot.slane %v3094_v23, 5  ;;  %v2540_v23 = vld [vmem:[%s3544_s1 + $0x1b0] sm:$0xff]  }
  0x49   : > { %2218 = vmatpush3.bf16.msra.mxu0 %v2534_v41  ;;  %v3158_v15 = vcombine.low %v506_v61, %v509_v4  ;;  %v515_v16 = vrot.slane %v3128_v52, 5  ;;  %v3168_v22 = vcombine.low %v3137_v63, %v3140_v0  ;;  %v420_v29 = vrot.slane %v418_v9, 4  ;;  %v2545_v61 = vld [vmem:[%s3544_s1 + $0x1b8] sm:$0xff]  }
  0x4a   : > { %2282 = vmatpush3.bf16.msra.mxu1 %v2535_v47  ;;  %2219 = vmatprep.subr.bf16.mxu0 %v2537_v48  ;;  %v406_v20 = vsel %vm2882_vm5, %v401_v12, %v405_v58  ;;  %v411_v21 = vrot.slane %v410_v13, 4  ;;  %v514_v24 = vrot.slane %v512_v14, 4  ;;  %v423_v31 = vrot.slane %v421_v10, 5  ;;  %v2547_v10 = vld [vmem:[%s3544_s1 + $0x208] sm:$0xff]  }
  0x4b   : > { %1345 = vmatmul.mubr.bf16.gmra.mrb[12].mxu0 %v2975_v59  ;;  %2283 = vmatprep.subr.bf16.mxu1 %v2538_v7  ;;  %v427_v32 = vshll.u32 %v3140_v0, 16  ;;  %v433_v33 = vrot.slane %v431_v11, 4  ;;  %v437_v35 = vshll.u32 %v239_v28, 16  ;;  %v513_v41 = vsel %vm2876_vm4, %v1962_v2, %v512_v14 }
  0x4c   : > { %1442 = vmatmul.mubr.bf16.gmra.mrb[12].mxu1 %v3064_v1  ;;  %1352 = vmatprep.mubr.bf16.mxu0 %v3097_v26  ;;  %v416_v34 = vsel %vm2882_vm5, %v411_v21, %v415_v8  ;;  %v424_v37 = vor.u32 %v423_v31, %v420_v29  ;;  %v516_v47 = vsel %vm2876_vm4, %v514_v24, %v515_v16  ;;  %v519_v53 = vrot.slane %v3140_v0, 5  ;;  %v3272_v21 = vld [vmem:[%s2846_s12 + $0x6c] sm:$0xf]  ;;  %v3275_v24 = vld [vmem:[%s2846_s12 + $0x70] sm:$0xf] }
  0x4d   : > { %1449 = vmatprep.mubr.bf16.mxu1 %v3069_v5  ;;  %2220 = vmatpush3.bf16.msra.mxu0 %v2539_v17  ;;  %v3180_v36 = vcombine.low %v406_v20, %v416_v34  ;;  %v429_v38 = vrot.slane %v427_v32, 5  ;;  %v439_v42 = vrot.slane %v437_v35, 5  ;;  %v1963_v60 = vrot.slane %v3137_v63, 9  ;;  %v242_v20 = vld [vmem:[%s2846_s12 + $0x68] sm:$0x1] }
  0x4e   : > { %2284 = vmatpush3.bf16.msra.mxu1 %v2540_v23  ;;  %2221 = vmatprep.subr.bf16.mxu0 %v2542_v27  ;;  %v425_v48 = vrot.slane %v424_v37, 4  ;;  %v3212_v0 = vcombine.low %v513_v41, %v516_v47  ;;  %v3218_v4 = vcombine.low %v3190_v44, %v3193_v46  ;;  %v521_v6 = vrot.slane %v519_v53, 4  ;;  %v2554_v23 = vld [vmem:[%s3544_s1 + $0x238] sm:$0xff]  }
  0x4f   : > { %v434_v52 = vor.u32 %v433_v33, %v429_v38  ;;  %2285 = vmatprep.subr.bf16.mxu1 %v2543_v40  ;;  %v522_v63 = vrot.slane %v239_v28, 5  ;;  %v520_v7 = vsel %vm2876_vm4, %v1963_v60, %v519_v53  ;;  %v528_v11 = vshll.u32 %v3190_v44, 16 }
  0x50   : > { %v430_v56 = vsel %vm2882_vm5, %v425_v48, %v429_v38  ;;  %v538_v12 = vshrl.u32 %v3193_v46, 16  ;;  %v534_v13 = vshll.u32 %v3193_v46, 16  ;;  %v544_v29 = vshll.u32 %v242_v20, 16 }
  0x51   : > { %v435_v57 = vrot.slane %v434_v52, 4  ;;  %2222 = vmatpush3.bf16.msra.mxu0 %v2544_v54  ;;  %v523_v8 = vsel %vm2876_vm4, %v521_v6, %v522_v63  ;;  %v530_v14 = vrot.slane %v528_v11, 5  ;;  %v559_v31 = vshrl.u32 %v3272_v21, 16 }
  0x52   : > { %2286 = vmatpush3.bf16.msra.mxu1 %v2545_v61  ;;  %2351 = vmatprep.subr.bf16.mxu0 %v2546_v62  ;;  %v3230_v9 = vcombine.low %v520_v7, %v523_v8  ;;  %v536_v16 = vrot.slane %v534_v13, 5  ;;  %v540_v17 = vrot.slane %v538_v12, 4  ;;  %v562_v32 = vshll.u32 %v3272_v21, 16 }
  0x53   : > { %1353 = vmatmul.mubr.bf16.gmra.mrb[16].mxu0 %v3023_v30  ;;  %v440_v2 = vsel %vm2882_vm5, %v435_v57, %v439_v42  ;;  %2383 = vmatprep.subr.bf16.mxu1 %v2546_v62  ;;  %v568_v33 = vshll.u32 %v3275_v24, 16  ;;  %v546_v35 = vrot.slane %v544_v29, 5  ;;  %v561_v37 = vrot.slane %v559_v31, 4  ;;  %v245_v42 = vld [vmem:[%s2846_s12 + $0x74] sm:$0x1]  ;;  %s202_s12 = sand.u32 1, %s2625_s16  }
  0x54   : > { %1450 = vmatmul.mubr.bf16.gmra.mrb[16].mxu1 %v3110_v39  ;;  %1360 = vmatprep.mubr.bf16.mxu0 %v3145_v3  ;;  %v3220_v58 = vcombine.low %v430_v56, %v440_v2  ;;  %v541_v28 = vor.u32 %v540_v17, %v536_v16  ;;  %v564_v38 = vrot.slane %v562_v32, 5  ;;  %v553_v48 = vrot.slane %v3193_v46, 5  ;;  %s3413_s11 = sshll.u32 %s202_s12, 7  ;;  %s3491_s24 = scalar_lea.sflag [#allocation3], %s202_s12 }
  0x55   : > { %1457 = vmatprep.mubr.bf16.mxu1 %v3119_v45  ;;  %v570_v40 = vrot.slane %v568_v33, 5  ;;  %v578_v56 = vshll.u32 %v245_v42, 16  ;;  %v556_v60 = vrot.slane %v242_v20, 5  ;;  %v587_v51 = vrot.slane %v3275_v24, 5  ;;  %s3437_s30 = scalar_lea.vmem [#allocation2], %s3413_s11  ;;  %s2561_s11 = scalar_lea.vmem %s2560_s14, 4096 }
  0x56   : > { %v542_v34 = vrot.slane %v541_v28, 4  ;;  %v565_v53 = vor.u32 %v564_v38, %v561_v37  ;;  %s1868_s5 = sshll.u32 %s3437_s30, 4  ;;  %s3481_s5 = int_to_ptr.vmem [resolvable:$true] %s1868_s5 }
  0x57   : > { %v580_v2 = vrot.slane %v578_v56, 5  ;;  %s2555_s13 = scalar_lea.vmem %s3481_s5, 2048  ;;  %p2562_p2 = scmp.lt.s32.totalorder %s3481_s5, %s2560_s14 }
  0x58   : > { %v547_v52 = vsel %vm2882_vm5, %v542_v34, %v546_v35  ;;  %v566_v61 = vrot.slane %v565_v53, 4  ;;  %p2556_p13 = scmp.ne.s32.totalorder %s3481_s5, %s2555_s13  ;;  %p2563_p4 = scmp.lt.s32.totalorder %s2561_s11, %s2555_s13 }
  0x5a   : > { %p2557_p0 = pnand %p2556_p13, %p2730_p3  ;;  %p2564_p5 = por %p2563_p4, %p2562_p2 }
  0x5b   : > { %1361 = vmatmul.mubr.bf16.gmra.mrb[20].mxu0 %v3069_v5 }
  0x5c   : > { %1458 = vmatmul.mubr.bf16.gmra.mrb[20].mxu1 %v3158_v15  ;;  %1368 = vmatprep.mubr.bf16.mxu0 %v3180_v36  ;;  %p2558_p1 = pneg %p2557_p0 }
  0x5d   : > { %1465 = vmatprep.mubr.bf16.mxu1 %v3168_v22 }
  0x5e   : > { %p2565_p6 = pnand %p2564_p5, %p2558_p1 }
  0x63   : > { %1369 = vmatmul.mubr.bf16.gmra.mrb[24].mxu0 %v3119_v45 }
  0x64   : > { %1466 = vmatmul.mubr.bf16.gmra.mrb[24].mxu1 %v3212_v0  ;;  %1376 = vmatprep.mubr.bf16.mxu0 %v3220_v58 }
  0x65   : > { %1473 = vmatprep.mubr.bf16.mxu1 %v3218_v4 }
  0x6b   : > { %1377 = vmatmul.mubr.bf16.gmra.mrb[28].mxu0 %v3168_v22 }
  0x6c   : > { %1474 = vmatmul.mubr.bf16.gmra.mrb[28].mxu1 %v3230_v9  ;;  %1514 = vmatprep.mubr.bf16.mxu0 %v2967_v49  ;;  %v2548_v49 = vld [vmem:[%s3544_s1 + $0x210] sm:$0xff]  }
  0x6d   : > { %1611 = vmatprep.mubr.bf16.mxu1 %v3010_v18 }
  0x73   : > { %1515 = vmatmul.mubr.bf16.vlgmr.msra.gmra.mrb[32].mxu0 %v2956_v43  ;;  %v2550_v43 = vld [vmem:[%s3544_s1 + $0x220] sm:$0xff]  }
  0x74   : > { %1612 = vmatmul.mubr.bf16.vlgmr.msra.gmra.mrb[32].mxu1 %v2931_v25  ;;  %2352 = vmatpush3.bf16.msra.mxu0 %v2546_v62  ;;  %v2549_v25 = vld [vmem:[%s3544_s1 + $0x218] sm:$0xff]  }
  0x75   : > { %2391 = vmatpush3.bf16.msra.mxu1 %v2546_v62  ;;  %1522 = vmatprep.mubr.bf16.mxu0 %v3012_v19 }
  0x76   : > { %1619 = vmatprep.mubr.bf16.mxu1 %v3055_v55  ;;  %2353 = vmatprep.subr.bf16.mxu0 %v2547_v10 }
  0x77   : > { %2384 = vmatprep.subr.bf16.mxu1 %v2547_v10 }
  0x78   : > { %2354 = vmatpush3.bf16.msra.mxu0 %v2547_v10 }
  0x79   : > { %2392 = vmatpush3.bf16.msra.mxu1 %v2547_v10  ;;  %2355 = vmatprep.subr.bf16.mxu0 %v2548_v49  ;;  %v589_v10 = vrot.slane %v587_v51, 4 }
  0x7a   : > { %2385 = vmatprep.subr.bf16.mxu1 %v2548_v49 }
  0x7b   : > { %1523 = vmatmul.mubr.bf16.gmra.mrb[36].mxu0 %v3010_v18  ;;  %v525_v18 = vshrl.u32 %v3190_v44, 16 }
  0x7c   : > { %1620 = vmatmul.mubr.bf16.gmra.mrb[36].mxu1 %v2975_v59  ;;  %1530 = vmatprep.mubr.bf16.mxu0 %v3064_v1  ;;  %v2551_v59 = vld [vmem:[%s3544_s1 + $0x228] sm:$0xff]  }
  0x7d   : > { %1627 = vmatprep.mubr.bf16.mxu1 %v3097_v26  ;;  %2356 = vmatpush3.bf16.msra.mxu0 %v2548_v49 }
  0x7e   : > { %2393 = vmatpush3.bf16.msra.mxu1 %v2548_v49  ;;  %2357 = vmatprep.subr.bf16.mxu0 %v2549_v25  ;;  %v590_v49 = vrot.slane %v245_v42, 5 }
  0x7f   : > { %2386 = vmatprep.subr.bf16.mxu1 %v2549_v25 }
  0x81   : > { %2358 = vmatpush3.bf16.msra.mxu0 %v2549_v25 }
  0x82   : > { %2394 = vmatpush3.bf16.msra.mxu1 %v2549_v25  ;;  %2359 = vmatprep.subr.bf16.mxu0 %v2550_v43 }
  0x83   : > { %2387 = vmatprep.subr.bf16.mxu1 %v2550_v43  ;;  %1531 = vmatmul.mubr.bf16.gmra.mrb[40].mxu0 %v3055_v55  ;;  %v527_v55 = vrot.slane %v525_v18, 4 }
  0x84   : > { %1628 = vmatmul.mubr.bf16.gmra.mrb[40].mxu1 %v3023_v30  ;;  %1538 = vmatprep.mubr.bf16.mxu0 %v3110_v39  ;;  %v2552_v30 = vld [vmem:[%s3544_s1 + $0x230] sm:$0xff]  }
  0x85   : > { %1635 = vmatprep.mubr.bf16.mxu1 %v3145_v3  ;;  %2360 = vmatpush3.bf16.msra.mxu0 %v2550_v43  ;;  %v531_v27 = vor.u32 %v530_v14, %v527_v55 }
  0x86   : > { %2395 = vmatpush3.bf16.msra.mxu1 %v2550_v43  ;;  %2361 = vmatprep.subr.bf16.mxu0 %v2551_v59 }
  0x87   : > { %2388 = vmatprep.subr.bf16.mxu1 %v2551_v59 }
  0x89   : > { %2362 = vmatpush3.bf16.msra.mxu0 %v2551_v59 }
  0x8a   : > { %2396 = vmatpush3.bf16.msra.mxu1 %v2551_v59  ;;  %2363 = vmatprep.subr.bf16.mxu0 %v2552_v30 }
  0x8b   : > { %2389 = vmatprep.subr.bf16.mxu1 %v2552_v30  ;;  %1539 = vmatmul.mubr.bf16.gmra.mrb[44].mxu0 %v3097_v26  ;;  %v572_v26 = vshrl.u32 %v3275_v24, 16 }
  0x8c   : > { %1636 = vmatmul.mubr.bf16.gmra.mrb[44].mxu1 %v3069_v5  ;;  %1546 = vmatprep.mubr.bf16.mxu0 %v3158_v15  ;;  %v532_v5 = vrot.slane %v531_v27, 4 }
  0x8d   : > { %1643 = vmatprep.mubr.bf16.mxu1 %v3180_v36  ;;  %2364 = vmatpush3.bf16.msra.mxu0 %v2552_v30  ;;  %v574_v41 = vrot.slane %v572_v26, 4 }
  0x8e   : > { %2397 = vmatpush3.bf16.msra.mxu1 %v2552_v30  ;;  %2365 = vmatprep.subr.bf16.mxu0 %v2554_v23  ;;  %v537_v47 = vsel %vm2882_vm5, %v532_v5, %v536_v16 }
  0x8f   : > { %2390 = vmatprep.subr.bf16.mxu1 %v2554_v23  ;;  %v575_v54 = vor.u32 %v574_v41, %v570_v40  ;;  %v1991_v57 = vcombine.low %v537_v47, %v547_v52 }
  0x91   : > { %2366 = vmatpush3.bf16.msra.mxu0 %v2554_v23  ;;  %v576_v62 = vrot.slane %v575_v54, 4 }
  0x92   : > { %2398 = vmatpush3.bf16.msra.mxu1 %v2554_v23 }
  0x93   : > { %1547 = vmatmul.mubr.bf16.gmra.mrb[48].mxu0 %v3145_v3  ;;  %v1964_v3 = vrot.slane %v3190_v44, 9  ;;  %v571_v44 = vsel %vm2882_vm5, %v566_v61, %v570_v40  ;;  %v581_v63 = vsel %vm2882_vm5, %v576_v62, %v580_v2 }
  0x94   : > { %1644 = vmatmul.mubr.bf16.gmra.mrb[48].mxu1 %v3119_v45  ;;  %1554 = vmatprep.mubr.bf16.mxu0 %v3212_v0  ;;  %v555_v45 = vrot.slane %v553_v48, 4  ;;  %v1994_v8 = vcombine.low %v571_v44, %v581_v63 }
  0x95   : > { %1651 = vmatprep.mubr.bf16.mxu1 %v3220_v58  ;;  %v554_v46 = vsel %vm2876_vm4, %v1964_v3, %v553_v48 }
  0x96   : > { %v557_v6 = vsel %vm2876_vm4, %v555_v45, %v556_v60 }
  0x97   : > { %v1992_v7 = vcombine.low %v554_v46, %v557_v6 }
  0x9b   : > { %1555 = vmatmul.mubr.bf16.gmra.mrb[52].mxu0 %v3180_v36  ;;  %v1965_v36 = vrot.slane %v3272_v21, 9 }
  0x9c   : > { %1652 = vmatmul.mubr.bf16.gmra.mrb[52].mxu1 %v3168_v22  ;;  %1562 = vmatprep.mubr.bf16.mxu0 %v3230_v9  ;;  %v1993_v22 = vcombine.low %v3272_v21, %v3275_v24 }
  0x9d   : > { %1659 = vmatprep.mubr.bf16.mxu1 %v1991_v57 }
  0xa3   : > { %1563 = vmatmul.mubr.bf16.gmra.mrb[56].mxu0 %v3220_v58 }
  0xa4   : > { %1660 = vmatmul.mubr.bf16.gmra.mrb[56].mxu1 %v3218_v4  ;;  %1570 = vmatprep.mubr.bf16.mxu0 %v1992_v7  ;;  %v588_v4 = vsel %vm2876_vm4, %v1965_v36, %v587_v51 }
  0xa5   : > { %1667 = vmatprep.mubr.bf16.mxu1 %v1994_v8 }
  0xab   : > { %1571 = vmatmul.mubr.bf16.gmra.mrb[60].mxu0 %v1991_v57 }
  0xac   : > { %1668 = vmatmul.mubr.bf16.gmra.mrb[60].mxu1 %v1993_v22  ;;  %2367 = vmatprep.mubr.bf16.mxu0 %v3012_v19  ;;  %v591_v19 = vsel %vm2876_vm4, %v589_v10, %v590_v49 }
  0xad   : > { %2375 = vmatprep.mubr.bf16.mxu1 %v3212_v0  ;;  %v1995_v0 = vcombine.low %v588_v4, %v591_v19 }
  0xb3   : > { %2368 = vmatmul.mubr.bf16.vlgmr.msra.gmra.mrb[64].mxu0 %v3064_v1 }
  0xb4   : > { %2376 = vmatmul.mubr.bf16.vlgmr.msra.gmra.mrb[64].mxu1 %v3230_v9  ;;  %2371 = vmatprep.mubr.bf16.mxu0 %v3110_v39 }
  0xb5   : > { %2379 = vmatprep.mubr.bf16.mxu1 %v1992_v7 }
  0xbb   : > { %2372 = vmatmul.mubr.bf16.gmra.mrb[68].mxu0 %v3158_v15 }
  0xbc   : > { %2380 = vmatmul.mubr.bf16.gmra.mrb[68].mxu1 %v1995_v0 }
 0x106   : > { %v2095_v58 = vpop.f32.mrb[0].mxu0 }
 0x107   : > { %v2159_v25 = vpop.f32.mrb[0].mxu1  ;;  %v2096_v43 = vpop.f32.mrb[1].mxu0 }
 0x108   : > { %v2160_v59 = vpop.f32.mrb[1].mxu1  ;;  %v2097_v1 = vadd.f32 %v2096_v43, %v2095_v58  ;;  %v2098_v9 = vpop.f32.mrb[2].mxu0 }
 0x109   : > { %v2161_v18 = vadd.f32 %v2160_v59, %v2159_v25  ;;  %v2162_v11 = vpop.f32.mrb[2].mxu1  ;;  %v2099_v39 = vpop.f32.mrb[3].mxu0 }
 0x10a   : > { %v2163_v12 = vpop.f32.mrb[3].mxu1  ;;  %v2100_v30 = vadd.f32 %v2099_v39, %v2098_v9 }
 0x10b   : > { %v3326_v13 = vadd.f32 %v2161_v18, %v2097_v1  ;;  %v2164_v55 = vadd.f32 %v2163_v12, %v2162_v11 }
 0x10d   : > { %v3328_v50 = vadd.f32 %v2164_v55, %v2100_v30 }
 0x10e   : > { %v2101_v14 = vpop.f32.mrb[4].mxu0 }
 0x10f   : > { %v2165_v16 = vpop.f32.mrb[4].mxu1  ;;  %v2102_v15 = vpop.f32.mrb[5].mxu0 }
 0x110   : > { %v2166_v17 = vpop.f32.mrb[5].mxu1  ;;  %v2103_v20 = vadd.f32 %v2102_v15, %v2101_v14  ;;  %v2104_v24 = vpop.f32.mrb[6].mxu0 }
 0x111   : > { %v2167_v21 = vadd.f32 %v2166_v17, %v2165_v16  ;;  %v2168_v23 = vpop.f32.mrb[6].mxu1  ;;  %v2105_v27 = vpop.f32.mrb[7].mxu0 }
 0x112   : > { %v2169_v28 = vpop.f32.mrb[7].mxu1  ;;  %v2106_v31 = vadd.f32 %v2105_v27, %v2104_v24 }
 0x113   : > { %v3330_v29 = vadd.f32 %v2167_v21, %v2103_v20  ;;  %v2170_v32 = vadd.f32 %v2169_v28, %v2168_v23 }
 0x115   : > { %v3332_v33 = vadd.f32 %v2170_v32, %v2106_v31 }
 0x116   : > { %v2107_v26 = vpop.f32.mrb[8].mxu0 }
 0x117   : > { %v2171_v5 = vpop.f32.mrb[8].mxu1  ;;  %v2108_v34 = vpop.f32.mrb[9].mxu0 }
 0x118   : > { %v2172_v35 = vpop.f32.mrb[9].mxu1  ;;  %v2109_v37 = vadd.f32 %v2108_v34, %v2107_v26  ;;  %v2110_v40 = vpop.f32.mrb[10].mxu0 }
 0x119   : > { %v2173_v38 = vadd.f32 %v2172_v35, %v2171_v5  ;;  %v2174_v41 = vpop.f32.mrb[10].mxu1  ;;  %v2111_v42 = vpop.f32.mrb[11].mxu0 }
 0x11a   : > { %v2175_v47 = vpop.f32.mrb[11].mxu1  ;;  %v2112_v52 = vadd.f32 %v2111_v42, %v2110_v40 }
 0x11b   : > { %v3334_v48 = vadd.f32 %v2173_v38, %v2109_v37  ;;  %v2176_v53 = vadd.f32 %v2175_v47, %v2174_v41 }
 0x11d   : > { %v3336_v54 = vadd.f32 %v2176_v53, %v2112_v52 }
 0x11e   : > { %v2113_v56 = vpop.f32.mrb[12].mxu0 }
 0x11f   : > { %v2177_v57 = vpop.f32.mrb[12].mxu1  ;;  %v2114_v3 = vpop.f32.mrb[13].mxu0 }
 0x120   : > { %v2178_v60 = vpop.f32.mrb[13].mxu1  ;;  %v2115_v45 = vadd.f32 %v2114_v3, %v2113_v56  ;;  %v2116_v62 = vpop.f32.mrb[14].mxu0 }
 0x121   : > { %v2179_v61 = vadd.f32 %v2178_v60, %v2177_v57  ;;  %v2180_v2 = vpop.f32.mrb[14].mxu1  ;;  %v2117_v46 = vpop.f32.mrb[15].mxu0 }
 0x122   : > { %v2181_v6 = vpop.f32.mrb[15].mxu1  ;;  %v2118_v63 = vadd.f32 %v2117_v46, %v2116_v62 }
 0x123   : > { %v3338_v44 = vadd.f32 %v2179_v61, %v2115_v45  ;;  %v2182_v7 = vadd.f32 %v2181_v6, %v2180_v2 }
 0x125   : > { %v3340_v8 = vadd.f32 %v2182_v7, %v2118_v63 }
 0x126   : > { %v2119_v22 = vpop.f32.mrb[16].mxu0 }
 0x127   : > { %v2183_v51 = vpop.f32.mrb[16].mxu1  ;;  %v2120_v36 = vpop.f32.mrb[17].mxu0 }
 0x128   : > { %v2184_v10 = vpop.f32.mrb[17].mxu1  ;;  %v2121_v49 = vadd.f32 %v2120_v36, %v2119_v22  ;;  %v2122_v19 = vpop.f32.mrb[18].mxu0 }
 0x129   : > { %v2185_v4 = vadd.f32 %v2184_v10, %v2183_v51  ;;  %v2186_v0 = vpop.f32.mrb[18].mxu1  ;;  %v2123_v58 = vpop.f32.mrb[19].mxu0 }
 0x12a   : > { %v2187_v25 = vpop.f32.mrb[19].mxu1  ;;  %v2124_v59 = vadd.f32 %v2123_v58, %v2122_v19 }
 0x12b   : > { %v3342_v43 = vadd.f32 %v2185_v4, %v2121_v49  ;;  %v2188_v1 = vadd.f32 %v2187_v25, %v2186_v0 }
 0x12d   : > { %v3344_v18 = vadd.f32 %v2188_v1, %v2124_v59 }
 0x12e   : > { %v2125_v9 = vpop.f32.mrb[20].mxu0 }
 0x12f   : > { %v2189_v11 = vpop.f32.mrb[20].mxu1  ;;  %v2126_v39 = vpop.f32.mrb[21].mxu0 }
 0x130   : > { %v2190_v12 = vpop.f32.mrb[21].mxu1  ;;  %v2127_v30 = vadd.f32 %v2126_v39, %v2125_v9  ;;  %v2128_v14 = vpop.f32.mrb[22].mxu0 }
 0x131   : > { %v2191_v55 = vadd.f32 %v2190_v12, %v2189_v11  ;;  %v2192_v16 = vpop.f32.mrb[22].mxu1  ;;  %v2129_v15 = vpop.f32.mrb[23].mxu0 }
 0x132   : > { %v2193_v17 = vpop.f32.mrb[23].mxu1  ;;  %v2130_v21 = vadd.f32 %v2129_v15, %v2128_v14 }
 0x133   : > { %v3346_v20 = vadd.f32 %v2191_v55, %v2127_v30  ;;  %v2194_v24 = vadd.f32 %v2193_v17, %v2192_v16 }
 0x135   : > { %v3348_v23 = vadd.f32 %v2194_v24, %v2130_v21 }
 0x136   : > { %v2131_v27 = vpop.f32.mrb[24].mxu0 }
 0x137   : > { %v2195_v28 = vpop.f32.mrb[24].mxu1  ;;  %v2132_v31 = vpop.f32.mrb[25].mxu0 }
 0x138   : > { %v2196_v32 = vpop.f32.mrb[25].mxu1  ;;  %v2133_v26 = vadd.f32 %v2132_v31, %v2131_v27  ;;  %v2134_v34 = vpop.f32.mrb[26].mxu0 }
 0x139   : > { %v2197_v5 = vadd.f32 %v2196_v32, %v2195_v28  ;;  %v2198_v35 = vpop.f32.mrb[26].mxu1  ;;  %v2135_v37 = vpop.f32.mrb[27].mxu0 }
 0x13a   : > { %v2199_v38 = vpop.f32.mrb[27].mxu1  ;;  %v2136_v41 = vadd.f32 %v2135_v37, %v2134_v34 }
 0x13b   : > { %v3350_v40 = vadd.f32 %v2197_v5, %v2133_v26  ;;  %v2200_v42 = vadd.f32 %v2199_v38, %v2198_v35 }
 0x13d   : > { %v3352_v47 = vadd.f32 %v2200_v42, %v2136_v41 }
 0x13e   : > { %v2137_v52 = vpop.f32.mrb[28].mxu0 }
 0x13f   : > { %v2201_v53 = vpop.f32.mrb[28].mxu1  ;;  %v2138_v56 = vpop.f32.mrb[29].mxu0 }
 0x140   : > { %v2202_v57 = vpop.f32.mrb[29].mxu1  ;;  %v2139_v3 = vadd.f32 %v2138_v56, %v2137_v52  ;;  %v2140_v45 = vpop.f32.mrb[30].mxu0 }
 0x141   : > { %v2203_v60 = vadd.f32 %v2202_v57, %v2201_v53  ;;  %v2204_v61 = vpop.f32.mrb[30].mxu1  ;;  %v2141_v62 = vpop.f32.mrb[31].mxu0 }
 0x142   : > { %v2205_v2 = vpop.f32.mrb[31].mxu1  ;;  %v2142_v6 = vadd.f32 %v2141_v62, %v2140_v45 }
 0x143   : > { %v3354_v46 = vadd.f32 %v2203_v60, %v2139_v3  ;;  %v2206_v63 = vadd.f32 %v2205_v2, %v2204_v61 }
 0x145   : > { %v3356_v7 = vadd.f32 %v2206_v63, %v2142_v6 }
 0x146   : > { %v2223_v22 = vpop.f32.mrb[32].mxu0 }
 0x147   : > { %v2287_v51 = vpop.f32.mrb[32].mxu1  ;;  %v2224_v36 = vpop.f32.mrb[33].mxu0 }
 0x148   : > { %v2288_v10 = vpop.f32.mrb[33].mxu1  ;;  %v2225_v49 = vadd.f32 %v2224_v36, %v2223_v22  ;;  %v2226_v19 = vpop.f32.mrb[34].mxu0 }
 0x149   : > { %v2289_v4 = vadd.f32 %v2288_v10, %v2287_v51  ;;  %v2290_v0 = vpop.f32.mrb[34].mxu1  ;;  %v2227_v58 = vpop.f32.mrb[35].mxu0 }
 0x14a   : > { %v2291_v25 = vpop.f32.mrb[35].mxu1  ;;  %v1517_v59 = vadd.f32 %v2225_v49, %v3326_v13  ;;  %v2228_v1 = vadd.f32 %v2227_v58, %v2226_v19 }
 0x14b   : > { %v2292_v9 = vadd.f32 %v2291_v25, %v2290_v0 }
 0x14c   : > { %v1520_v11 = vadd.f32 %v2228_v1, %v3328_v50  ;;  %v3360_v39 = vadd.f32 %v2289_v4, %v1517_v59 }
 0x14e   : > { %v2229_v12 = vpop.f32.mrb[36].mxu0  ;;  %v3362_v55 = vadd.f32 %v2292_v9, %v1520_v11 }
 0x14f   : > { %v2293_v30 = vpop.f32.mrb[36].mxu1  ;;  %v2230_v14 = vpop.f32.mrb[37].mxu0 }
 0x150   : > { %v2294_v16 = vpop.f32.mrb[37].mxu1  ;;  %v2231_v15 = vadd.f32 %v2230_v14, %v2229_v12  ;;  %v2232_v21 = vpop.f32.mrb[38].mxu0 }
 0x151   : > { %v2295_v17 = vadd.f32 %v2294_v16, %v2293_v30  ;;  %v2296_v24 = vpop.f32.mrb[38].mxu1  ;;  %v2233_v27 = vpop.f32.mrb[39].mxu0 }
 0x152   : > { %v2297_v28 = vpop.f32.mrb[39].mxu1  ;;  %v1525_v13 = vadd.f32 %v2231_v15, %v3330_v29  ;;  %v2234_v31 = vadd.f32 %v2233_v27, %v2232_v21 }
 0x153   : > { %v2298_v32 = vadd.f32 %v2297_v28, %v2296_v24 }
 0x154   : > { %v1528_v50 = vadd.f32 %v2234_v31, %v3332_v33  ;;  %v3366_v26 = vadd.f32 %v2295_v17, %v1525_v13 }
 0x156   : > { %v2235_v5 = vpop.f32.mrb[40].mxu0  ;;  %v3368_v35 = vadd.f32 %v2298_v32, %v1528_v50 }
 0x157   : > { %v2299_v34 = vpop.f32.mrb[40].mxu1  ;;  %v2236_v37 = vpop.f32.mrb[41].mxu0 }
 0x158   : > { %v2300_v38 = vpop.f32.mrb[41].mxu1  ;;  %v2237_v41 = vadd.f32 %v2236_v37, %v2235_v5  ;;  %v2238_v52 = vpop.f32.mrb[42].mxu0 }
 0x159   : > { %v2301_v42 = vadd.f32 %v2300_v38, %v2299_v34  ;;  %v2302_v53 = vpop.f32.mrb[42].mxu1  ;;  %v2239_v56 = vpop.f32.mrb[43].mxu0 }
 0x15a   : > { %v2303_v57 = vpop.f32.mrb[43].mxu1  ;;  %v1533_v29 = vadd.f32 %v2237_v41, %v3334_v48  ;;  %v2240_v3 = vadd.f32 %v2239_v56, %v2238_v52 }
 0x15b   : > { %v2304_v60 = vadd.f32 %v2303_v57, %v2302_v53 }
 0x15c   : > { %v1536_v33 = vadd.f32 %v2240_v3, %v3336_v54  ;;  %v3372_v45 = vadd.f32 %v2301_v42, %v1533_v29 }
 0x15e   : > { %v2241_v61 = vpop.f32.mrb[44].mxu0  ;;  %v3374_v2 = vadd.f32 %v2304_v60, %v1536_v33 }
 0x15f   : > { %v2305_v62 = vpop.f32.mrb[44].mxu1  ;;  %v2242_v6 = vpop.f32.mrb[45].mxu0 }
 0x160   : > { %v2306_v63 = vpop.f32.mrb[45].mxu1  ;;  %v2243_v22 = vadd.f32 %v2242_v6, %v2241_v61  ;;  %v2244_v36 = vpop.f32.mrb[46].mxu0 }
 0x161   : > { %v2307_v51 = vadd.f32 %v2306_v63, %v2305_v62  ;;  %v2308_v10 = vpop.f32.mrb[46].mxu1  ;;  %v2245_v49 = vpop.f32.mrb[47].mxu0 }
 0x162   : > { %v2309_v4 = vpop.f32.mrb[47].mxu1  ;;  %v1541_v48 = vadd.f32 %v2243_v22, %v3338_v44  ;;  %v2246_v19 = vadd.f32 %v2245_v49, %v2244_v36 }
 0x163   : > { %v2310_v0 = vadd.f32 %v2309_v4, %v2308_v10 }
 0x164   : > { %v1544_v54 = vadd.f32 %v2246_v19, %v3340_v8  ;;  %v3378_v58 = vadd.f32 %v2307_v51, %v1541_v48 }
 0x166   : > { %v2247_v25 = vpop.f32.mrb[48].mxu0  ;;  %v3380_v1 = vadd.f32 %v2310_v0, %v1544_v54 }
 0x167   : > { %v2311_v59 = vpop.f32.mrb[48].mxu1  ;;  %v2248_v9 = vpop.f32.mrb[49].mxu0 }
 0x168   : > { %v2312_v11 = vpop.f32.mrb[49].mxu1  ;;  %v2249_v12 = vadd.f32 %v2248_v9, %v2247_v25  ;;  %v2250_v14 = vpop.f32.mrb[50].mxu0 }
 0x169   : > { %v2313_v30 = vadd.f32 %v2312_v11, %v2311_v59  ;;  %v2314_v16 = vpop.f32.mrb[50].mxu1  ;;  %v2251_v15 = vpop.f32.mrb[51].mxu0 }
 0x16a   : > { %v2315_v17 = vpop.f32.mrb[51].mxu1  ;;  %v1549_v44 = vadd.f32 %v2249_v12, %v3342_v43  ;;  %v2252_v21 = vadd.f32 %v2251_v15, %v2250_v14 }
 0x16b   : > { %v2316_v24 = vadd.f32 %v2315_v17, %v2314_v16 }
 0x16c   : > { %v1552_v8 = vadd.f32 %v2252_v21, %v3344_v18  ;;  %v1646_v27 = vadd.f32 %v2313_v30, %v1549_v44  ;;  %v3400_v44 = vld [vmem:[%s3545_s2] ss:$0 sm:$0xff] }
 0x16e   : > { %v2253_v28 = vpop.f32.mrb[52].mxu0  ;;  %v3384_v31 = vadd.f32 %v2316_v24, %v1552_v8 }
 0x16f   : > { %v2317_v13 = vpop.f32.mrb[52].mxu1  ;;  %v2254_v32 = vpop.f32.mrb[53].mxu0 }
 0x170   : > { %v2318_v50 = vpop.f32.mrb[53].mxu1  ;;  %v2255_v5 = vadd.f32 %v2254_v32, %v2253_v28  ;;  %v2256_v37 = vpop.f32.mrb[54].mxu0 }
 0x171   : > { %v2319_v34 = vadd.f32 %v2318_v50, %v2317_v13  ;;  %v2320_v38 = vpop.f32.mrb[54].mxu1  ;;  %v2257_v41 = vpop.f32.mrb[55].mxu0 }
 0x172   : > { %v2321_v42 = vpop.f32.mrb[55].mxu1  ;;  %v1557_v52 = vadd.f32 %v2255_v5, %v3346_v20  ;;  %v2258_v43 = vadd.f32 %v2257_v41, %v2256_v37 }
 0x173   : > { %v2322_v53 = vadd.f32 %v2321_v42, %v2320_v38 }
 0x174   : > { %v1560_v56 = vadd.f32 %v2258_v43, %v3348_v23  ;;  %v1654_v18 = vadd.f32 %v2319_v34, %v1557_v52 }
 0x176   : > { %v2259_v57 = vpop.f32.mrb[56].mxu0  ;;  %v1657_v3 = vadd.f32 %v2322_v53, %v1560_v56 }
 0x177   : > { %v2323_v29 = vpop.f32.mrb[56].mxu1  ;;  %v2260_v60 = vpop.f32.mrb[57].mxu0 }
 0x178   : > { %v2324_v33 = vpop.f32.mrb[57].mxu1  ;;  %v2261_v61 = vadd.f32 %v2260_v60, %v2259_v57  ;;  %v2262_v6 = vpop.f32.mrb[58].mxu0 }
 0x179   : > { %v2325_v62 = vadd.f32 %v2324_v33, %v2323_v29  ;;  %v2326_v63 = vpop.f32.mrb[58].mxu1  ;;  %v2263_v22 = vpop.f32.mrb[59].mxu0 }
 0x17a   : > { %v2327_v51 = vpop.f32.mrb[59].mxu1  ;;  %v1565_v36 = vadd.f32 %v2261_v61, %v3350_v40  ;;  %v2264_v10 = vadd.f32 %v2263_v22, %v2262_v6 }
 0x17b   : > { %v2328_v20 = vadd.f32 %v2327_v51, %v2326_v63 }
 0x17c   : > { %v1568_v49 = vadd.f32 %v2264_v10, %v3352_v47  ;;  %v3390_v4 = vadd.f32 %v2325_v62, %v1565_v36 }
 0x17e   : > { %v2265_v23 = vpop.f32.mrb[60].mxu0  ;;  %v3392_v19 = vadd.f32 %v2328_v20, %v1568_v49 }
 0x17f   : > { %v2329_v48 = vpop.f32.mrb[60].mxu1  ;;  %v2266_v0 = vpop.f32.mrb[61].mxu0 }
 0x180   : > { %v2330_v54 = vpop.f32.mrb[61].mxu1  ;;  %v2267_v25 = vadd.f32 %v2266_v0, %v2265_v23  ;;  %v2268_v9 = vpop.f32.mrb[62].mxu0 }
 0x181   : > { %v2331_v59 = vadd.f32 %v2330_v54, %v2329_v48  ;;  %v2332_v11 = vpop.f32.mrb[62].mxu1  ;;  %v2269_v12 = vpop.f32.mrb[63].mxu0 }
 0x182   : > { %v2333_v30 = vpop.f32.mrb[63].mxu1  ;;  %v1573_v40 = vadd.f32 %v2267_v25, %v3354_v46  ;;  %v2270_v14 = vadd.f32 %v2269_v12, %v2268_v9 }
 0x183   : > { %v2334_v16 = vadd.f32 %v2333_v30, %v2332_v11 }
 0x184   : > { %v1576_v47 = vadd.f32 %v2270_v14, %v3356_v7  ;;  %v1670_v15 = vadd.f32 %v2331_v59, %v1573_v40  ;;  %v3408_v7 = vld [vmem:[%s3546_s3] ss:$0 sm:$0xff] }
 0x186   : > { %v2369_v17 = vpop.f32.mrb[64].mxu0  ;;  %v3402_v24 = vadd.f32 %v2334_v16, %v1576_v47 }
 0x187   : > { %v2377_v21 = vpop.f32.mrb[64].mxu1  ;;  %v1719_v8 = vadd.f32 %v2369_v17, %v3366_v26  ;;  %v1710_v46 = vpop.f32.mrb[65].mxu0 }
 0x188   : > { %v1751_v28 = vadd.f32 %v2377_v21, %v1654_v18  ;;  %v1742_v13 = vpop.f32.mrb[65].mxu1  ;;  %v1711_v32 = vadd.f32 %v1710_v46, %v3360_v39  ;;  %v2370_v5 = vpop.f32.mrb[66].mxu0 }
 0x189   : > { %v1743_v50 = vadd.f32 %v1742_v13, %v1646_v27  ;;  %v2378_v34 = vpop.f32.mrb[66].mxu1  ;;  %v1782_v37 = vmul.f32 %v3400_v44, %v1719_v8  ;;  %v1722_v38 = vadd.f32 %v2370_v5, %v3368_v35  ;;  %v1713_v42 = vpop.f32.mrb[67].mxu0 }
 0x18a   : > { %v1790_v26 = vmul.f32 %v3400_v44, %v1751_v28  ;;  %v1754_v41 = vadd.f32 %v2378_v34, %v1657_v3  ;;  %v1745_v52 = vpop.f32.mrb[67].mxu1  ;;  %v1780_v43 = vmul.f32 %v3400_v44, %v1711_v32  ;;  %v1714_v39 = vadd.f32 %v1713_v42, %v3362_v55 }
 0x18b   : > { %v1788_v53 = vmul.f32 %v3400_v44, %v1743_v50  ;;  %v1746_v27 = vadd.f32 %v1745_v52, %v3384_v31  ;;  %v1805_v56 = vadd.f32 %v3408_v7, %v1782_v37  ;;  %v1783_v57 = vmul.f32 %v3400_v44, %v1722_v38 }
 0x18c   : > { %v1813_v18 = vadd.f32 %v3408_v7, %v1790_v26  ;;  %v1791_v35 = vmul.f32 %v3400_v44, %v1754_v41  ;;  %v1803_v29 = vadd.f32 %v3408_v7, %v1780_v43  ;;  %v1781_v60 = vmul.f32 %v3400_v44, %v1714_v39 }
 0x18d   : > { %v1811_v3 = vadd.f32 %v3408_v7, %v1788_v53  ;;  %v1789_v55 = vmul.f32 %v3400_v44, %v1746_v27  ;;  %v1821_v31 = vmax.f32 %v1805_v56, 0.0  ;;  %v1806_v61 = vadd.f32 %v3408_v7, %v1783_v57 }
 0x18e   : > { %v1829_v33 = vmax.f32 %v1813_v18, 0.0  ;;  %v1814_v62 = vadd.f32 %v3408_v7, %v1791_v35  ;;  %v1819_v6 = vmax.f32 %v1803_v29, 0.0  ;;  %v1804_v22 = vadd.f32 %v3408_v7, %v1781_v60  ;;  %v2373_v36 = vpop.f32.mrb[68].mxu0 }
 0x18f   : > { %v1827_v63 = vmax.f32 %v1811_v3, 0.0  ;;  %v1812_v51 = vadd.f32 %v3408_v7, %v1789_v55  ;;  %v2381_v10 = vpop.f32.mrb[68].mxu1  ;;  %1837 = vst [vmem:[%s3437_s30 + $0x10] sm:$0xff] %v1821_v31  ;;  %v1822_v20 = vmax.f32 %v1806_v61, 0.0  ;;  %v1735_v23 = vadd.f32 %v2373_v36, %v3378_v58  ;;  %v1726_v0 = vpop.f32.mrb[69].mxu0 }
 0x190   : > { %1845 = vst [vmem:[%s3437_s30 + $0x50] sm:$0xff] %v1829_v33  ;;  %v1830_v49 = vmax.f32 %v1814_v62, 0.0  ;;  %v1767_v48 = vadd.f32 %v2381_v10, %v1670_v15  ;;  %v1758_v54 = vpop.f32.mrb[69].mxu1  ;;  %1835 = vst [vmem:[%s3437_s30] sm:$0xff] %v1819_v6  ;;  %v1820_v25 = vmax.f32 %v1804_v22, 0.0  ;;  %v1727_v9 = vadd.f32 %v1726_v0, %v3372_v45  ;;  %v2374_v12 = vpop.f32.mrb[70].mxu0 }
 0x191   : > { %1843 = vst [vmem:[%s3437_s30 + $0x40] sm:$0xff] %v1827_v63  ;;  %v1828_v59 = vmax.f32 %v1812_v51, 0.0  ;;  %v1759_v11 = vadd.f32 %v1758_v54, %v3390_v4  ;;  %v2382_v30 = vpop.f32.mrb[70].mxu1  ;;  %1838 = vst [vmem:[%s3437_s30 + $0x18] sm:$0xff] %v1822_v20  ;;  %v1786_v40 = vmul.f32 %v3400_v44, %v1735_v23  ;;  %v1738_v14 = vadd.f32 %v2374_v12, %v3380_v1  ;;  %v1729_v47 = vpop.f32.mrb[71].mxu0 }
 0x192   : > { %1846 = vst [vmem:[%s3437_s30 + $0x58] sm:$0xff] %v1830_v49  ;;  %v1794_v58 = vmul.f32 %v3400_v44, %v1767_v48  ;;  %v1770_v16 = vadd.f32 %v2382_v30, %v3402_v24  ;;  %v1761_v15 = vpop.f32.mrb[71].mxu1  ;;  %1836 = vst [vmem:[%s3437_s30 + $0x8] sm:$0xff] %v1820_v25  ;;  %v1784_v45 = vmul.f32 %v3400_v44, %v1727_v9 }
 0x193   : > { %1844 = vst [vmem:[%s3437_s30 + $0x48] sm:$0xff] %v1828_v59  ;;  %v1792_v4 = vmul.f32 %v3400_v44, %v1759_v11  ;;  %v1730_v17 = vadd.f32 %v1729_v47, %v3374_v2  ;;  %v1762_v21 = vadd.f32 %v1761_v15, %v3392_v19  ;;  %v1809_v1 = vadd.f32 %v3408_v7, %v1786_v40 }
 0x194   : > { %v1817_v24 = vadd.f32 %v3408_v7, %v1794_v58  ;;  %v1787_v8 = vmul.f32 %v3400_v44, %v1738_v14  ;;  %v1795_v28 = vmul.f32 %v3400_v44, %v1770_v16  ;;  %v1807_v46 = vadd.f32 %v3408_v7, %v1784_v45 }
 0x195   : > { %v1815_v13 = vadd.f32 %v3408_v7, %v1792_v4  ;;  %v1785_v32 = vmul.f32 %v3400_v44, %v1730_v17  ;;  %v1793_v2 = vmul.f32 %v3400_v44, %v1762_v21  ;;  %v1825_v19 = vmax.f32 %v1809_v1, 0.0 }
 0x196   : > { %v1833_v50 = vmax.f32 %v1817_v24, 0.0  ;;  %v1810_v5 = vadd.f32 %v3408_v7, %v1787_v8  ;;  %v1818_v34 = vadd.f32 %v3408_v7, %v1795_v28  ;;  %v1823_v37 = vmax.f32 %v1807_v46, 0.0 }
 0x197   : > { %v1831_v26 = vmax.f32 %v1815_v13, 0.0  ;;  %v1808_v38 = vadd.f32 %v3408_v7, %v1785_v32  ;;  %v1816_v44 = vadd.f32 %v3408_v7, %v1793_v2  ;;  %1841 = vst [vmem:[%s3437_s30 + $0x30] sm:$0xff] %v1825_v19 }
 0x198   : > { %1849 = vst [vmem:[%s3437_s30 + $0x70] sm:$0xff] %v1833_v50  ;;  %v1826_v41 = vmax.f32 %v1810_v5, 0.0  ;;  %v1834_v42 = vmax.f32 %v1818_v34, 0.0  ;;  %1839 = vst [vmem:[%s3437_s30 + $0x20] sm:$0xff] %v1823_v37 }
 0x199   : > { %1847 = vst [vmem:[%s3437_s30 + $0x60] sm:$0xff] %v1831_v26  ;;  %v1824_v52 = vmax.f32 %v1808_v38, 0.0  ;;  %v1832_v43 = vmax.f32 %v1816_v44, 0.0 }
 0x19a   : > { %1842 = vst [vmem:[%s3437_s30 + $0x38] sm:$0xff] %v1826_v41  ;;  %1850 = vst [vmem:[%s3437_s30 + $0x78] sm:$0xff] %v1834_v42 }
 0x19b   : > { %1840 = vst [vmem:[%s3437_s30 + $0x28] sm:$0xff] %v1824_v52  ;;  %1848 = vst [vmem:[%s3437_s30 + $0x68] sm:$0xff] %v1832_v43 }
 0x19c   : > { %2568 = shalt.err (!%p2565_p6)
}
 0x19d   : > { %s2569_s12 = scalar_lea.hbm %s3479_s10, 2048  ;;  %s2573_s30 = scalar_lea.hbm %s3547_s4, 8192 }
 0x19e   : > { %p2570_p7 = scmp.ne.s32.totalorder %s3479_s10, %s2569_s12  ;;  %p2574_p11 = scmp.lt.u32.totalorder %s3479_s10, %s3547_s4 }
 0x19f   : > { %p2575_p12 = scmp.lt.u32.totalorder %s2573_s30, %s2569_s12  ;;  %p2577_p0 = scmp.lt.u32.totalorder %s2569_s12, %s3479_s10 }
 0x1a0   : > { %p2571_p9 = pnand %p2570_p7, %p2730_p3 }
 0x1a1   : > { %p2576_p13 = por %p2575_p12, %p2574_p11 }
 0x1a2   : > { %p2572_p10 = pneg %p2571_p9 }
 0x1a3   : > { %p2578_p1 = por %p2577_p0, %p2576_p13 }
 0x1a5   : > { %p2579_p2 = pnand %p2578_p1, %p2572_p10 }
 0x1a7   : > { %2582 = shalt.err (!%p2579_p2)
}
 0x1a8   : > { %s2652_s8 = smov 128   ;;  %s2653_s9 = smov 8  }
 0x1a9   : > { %2400 = dma.vmem_to_hbm [thread:$0]  (%p2730_p3), %s3481_s5, 2048, %s3479_s10, %s3491_s24, %s2652_s8, %s2652_s8, %s2653_s9  }
 0x1aa PF: > { %p2406_p4 = scmp.ge.s32.totalorder %s2649_s22, 2  ;;  %s1883_s13 = sand.u32 1, %s2621_s15  }
 0x1ab   : > { %s1884_s6 = scalar_lea.sflag [#allocation3], %s1883_s13 }
 0x1ac   : > { %p2403_p5 = pnand %p2406_p4, %p2739_p8 }
 0x1ae   : > { %2616 = dma.done.wait (!%p2403_p5), %s1884_s6, 2048  }
 0x1af   : > { %2618 = vsyncadd (!%p2403_p5), %s1884_s6, 4294965248  ;;  %s17_s22 = sadd.s32 1, %s2649_s22   ;;  %s3554_s15 = smov %s2625_s16 }
 0x1b0   : > { %p14_p6 = scmp.ge.s32.totalorder %s17_s22, 6   ;;  %s3555_s16 = smov %s2629_s17 }
 0x1b1   : > { %s3556_s17 = smov %s2748_s7  ;;  %s3557_s18 = smov %s2641_s20 }
 0x1b2   : > { %s3558_s19 = smov %s2645_s21  ;;  %s3559_s20 = smov %s3562_s25 }
 0x1b3   : > { %s3560_s21 = smov %s3566_s26  ;;  %16 = sbr.rel (!%p14_p6) target bundleno = 5 (0x5), region = 72 }
 0x1ba   :  { %1889 = vsyncpa [#allocation3], 1 }
 0x1bb   :  { %1891 = vsyncpa [#allocation3 + $0x1], 1 }

</bundles_post_ra>
